<compile_context>
chip_gen: v5e
topology: v5e:2x2
jax: 0.10.0
libtpu: 0.0.40
codegen_flags: <defaults>
</compile_context>

<pallas_src>
import functools

import jax
import jax.numpy as jnp
from jax.experimental import pallas as pl
from jax.experimental.pallas import tpu as pltpu


# ----------------------------------------------------------------------------
# helpers
# ----------------------------------------------------------------------------
_LANE = 128
_GCN_TILE_TARGET = 2048   # adj tile target (bf16 double-buffer = 16 MiB)
_SSL_TILE_TARGET = 2048   # catalog tile target for ssl logits


def _round_up(x, m):
    return ((x + m - 1) // m) * m


def _pad2(x, rows, cols):
    r, c = x.shape
    return jnp.pad(x, ((0, rows - r), (0, cols - c)))


def _pick_tile(total, target, align=_LANE):
    """Largest multiple of `align` that divides `total` and is <= target."""
    best = align
    d = align
    limit = min(target, total)
    while d <= limit:
        if total % d == 0:
            best = d
        d += align
    return best


def _gcn_tiles(n, tile_target):
    """Pad N only to a lane multiple (NOT the tile) and pick divisor tiles."""
    np_ = _round_up(n, _LANE)
    # Prefer >= 2 row tiles so the ("parallel", ...) row axis can shard across
    # both v7x TensorCores whenever N allows it.
    tm = _pick_tile(np_, min(tile_target, max(np_ // 2, _LANE)))
    tk = _pick_tile(np_, tile_target)
    return np_, tm, tk


def _gcn_vmem_limit(tm, tk, dp):
    need = (2 * tm * tk * 2          # adj bf16, double-buffered
            + 2 * tk * dp * 2        # cur bf16
            + 2 * tm * dp * 4        # part f32
            + 2 * tm * dp * (2 + 4)  # outputs (new_cur bf16 + new_part f32)
            + tm * dp * 4)           # f32 accumulator scratch
    # Cap at 48 MiB: leaves headroom under v7x's 64 MiB physical VMEM and is
    # well inside v5e/v6e's 128 MiB.
    return int(min(max(need + (8 << 20), 32 << 20), 48 << 20))


# ----------------------------------------------------------------------------
# Pallas kernels
# ----------------------------------------------------------------------------
def gcn_layer_kernel(adj_ref, cur_ref, part_ref, newcur_ref, newpart_ref,
                     acc_ref):
    """One LightGCN layer tile: acc += adj_tile @ cur_tile (f32 accumulator).

    On the last reduction step emits:
      new_cur  = adj @ cur            (bf16, operand for the next layer)
      new_part = part + adj @ cur     (f32 running sum over layers)
    """
    k = pl.program_id(1)

    @pl.when(k == 0)
    def _():
        acc_ref[...] = jnp.zeros_like(acc_ref)

    acc_ref[...] += jnp.dot(adj_ref[...], cur_ref[...],
                            preferred_element_type=jnp.float32)

    @pl.when(k == pl.num_programs(1) - 1)
    def _():
        acc = acc_ref[...]
        newcur_ref[...] = acc.astype(newcur_ref.dtype)
        newpart_ref[...] = part_ref[...] + acc


def gcn_final_kernel(adj_ref, cur_ref, part_ref, out_ref, acc_ref, *,
                     inv_count, normalize):
    """Last LightGCN layer tile with fused mean-over-layers (+ optional L2)."""
    k = pl.program_id(1)

    @pl.when(k == 0)
    def _():
        acc_ref[...] = jnp.zeros_like(acc_ref)

    acc_ref[...] += jnp.dot(adj_ref[...], cur_ref[...],
                            preferred_element_type=jnp.float32)

    @pl.when(k == pl.num_programs(1) - 1)
    def _():
        mean = (part_ref[...] + acc_ref[...]) * jnp.float32(inv_count)
        if normalize:  # static Python flag (F.normalize(dim=1) semantics)
            ssq = jnp.sum(mean * mean, axis=-1, keepdims=True)
            mean = mean * jax.lax.rsqrt(jnp.maximum(ssq, jnp.float32(1e-24)))
        out_ref[...] = mean.astype(out_ref.dtype)


def ssl_kernel(e1_ref, pos_ref, all2_ref, o_ref):
    """ssl_logits tile: e1 @ all2_tile.T - pos (pos precomputed in wrapper)."""
    tot = jax.lax.dot_general(
        e1_ref[...], all2_ref[...], (((1,), (1,)), ((), ())),
        preferred_element_type=jnp.float32)
    o_ref[...] = tot - pos_ref[...]


# ----------------------------------------------------------------------------
# pallas_call wrappers
# ----------------------------------------------------------------------------
def gcn_layer_pallas(adj, cur, part, tm, tk):
    np_, dp = part.shape
    grid = (np_ // tm, np_ // tk)
    n_row_tiles = np_ // tm
    cost = pl.CostEstimate(
        flops=2 * np_ * np_ * dp, transcendentals=0,
        bytes_accessed=(np_ * np_ * 2                 # adj (bf16)
                        + np_ * dp * 2 * n_row_tiles  # cur re-read per row tile
                        + np_ * dp * 4                # part
                        + np_ * dp * (2 + 4)))        # outputs
    return pl.pallas_call(
        gcn_layer_kernel,
        out_shape=(jax.ShapeDtypeStruct((np_, dp), jnp.bfloat16),
                   jax.ShapeDtypeStruct((np_, dp), jnp.float32)),
        grid=grid,
        in_specs=[
            pl.BlockSpec((tm, tk), lambda i, k: (i, k)),   # adj (bf16)
            pl.BlockSpec((tk, dp), lambda i, k: (k, 0)),   # cur (bf16)
            pl.BlockSpec((tm, dp), lambda i, k: (i, 0)),   # running sum (f32)
        ],
        out_specs=(
            pl.BlockSpec((tm, dp), lambda i, k: (i, 0)),   # new_cur
            pl.BlockSpec((tm, dp), lambda i, k: (i, 0)),   # new_part
        ),
        scratch_shapes=[pltpu.VMEM((tm, dp), jnp.float32)],
        # part -> new_part only: aliasing cur -> new_cur would be a RAW hazard
        # because later row tiles re-read cur blocks already overwritten.
        input_output_aliases={2: 1},
        compiler_params=pltpu.CompilerParams(
            dimension_semantics=("parallel", "arbitrary"),
            vmem_limit_bytes=_gcn_vmem_limit(tm, tk, dp)),
        cost_estimate=cost,
    )(adj, cur, part)


def gcn_final_pallas(adj, cur, part, n_layers, normalize, tm, tk):
    np_, dp = part.shape
    grid = (np_ // tm, np_ // tk)
    n_row_tiles = np_ // tm
    kernel = functools.partial(gcn_final_kernel,
                               inv_count=1.0 / float(n_layers + 1),
                               normalize=normalize)
    cost = pl.CostEstimate(
        flops=2 * np_ * np_ * dp, transcendentals=0,
        bytes_accessed=(np_ * np_ * 2
                        + np_ * dp * 2 * n_row_tiles
                        + np_ * dp * 4
                        + np_ * dp * 4))
    return pl.pallas_call(
        kernel,
        out_shape=jax.ShapeDtypeStruct((np_, dp), jnp.float32),
        grid=grid,
        in_specs=[
            pl.BlockSpec((tm, tk), lambda i, k: (i, k)),
            pl.BlockSpec((tk, dp), lambda i, k: (k, 0)),
            pl.BlockSpec((tm, dp), lambda i, k: (i, 0)),
        ],
        out_specs=pl.BlockSpec((tm, dp), lambda i, k: (i, 0)),
        scratch_shapes=[pltpu.VMEM((tm, dp), jnp.float32)],
        input_output_aliases={2: 0},   # part -> output (same shape/dtype)
        compiler_params=pltpu.CompilerParams(
            dimension_semantics=("parallel", "arbitrary"),
            vmem_limit_bytes=_gcn_vmem_limit(tm, tk, dp)),
        cost_estimate=cost,
    )(adj, cur, part)


def ssl_logits_pallas(e1, e2, all2, tile_target=_SSL_TILE_TARGET):
    """e1 @ all2.T - <e1, e2>[:, None], tiled over the catalog dimension M."""
    b, dp = e1.shape
    m = all2.shape[0]
    bp = _round_up(max(b, 8), 8)
    mp = _round_up(m, _LANE)
    tn = _pick_tile(mp, tile_target)

    e1p = _pad2(e1.astype(jnp.float32), bp, dp)
    e2p = _pad2(e2.astype(jnp.float32), bp, dp)
    # Positive inner products once, in f32, outside the per-tile loop.
    pos = jnp.sum(e1p * e2p, axis=-1, keepdims=True)
    # Catalog table (the dominant HBM stream) in bf16; f32 accumulation inside.
    e1b = e1p.astype(jnp.bfloat16)
    a2p = _pad2(all2.astype(jnp.bfloat16), mp, dp)

    out = pl.pallas_call(
        ssl_kernel,
        out_shape=jax.ShapeDtypeStruct((bp, mp), jnp.float32),
        grid=(mp // tn,),
        in_specs=[
            pl.BlockSpec((bp, dp), lambda j: (0, 0)),   # e1 (bf16, resident)
            pl.BlockSpec((bp, 1), lambda j: (0, 0)),    # pos (f32, resident)
            pl.BlockSpec((tn, dp), lambda j: (j, 0)),   # catalog tile (bf16)
        ],
        out_specs=pl.BlockSpec((bp, tn), lambda j: (0, j)),
        compiler_params=pltpu.CompilerParams(
            dimension_semantics=("parallel",)),
    )(e1b, pos, a2p)
    return out[:b, :m]


# ----------------------------------------------------------------------------
# Model forward (glue in plain JAX, heavy compute in Pallas)
# ----------------------------------------------------------------------------
@functools.partial(jax.jit, static_argnames=("n_layers", "gcn_tile_target",
                                             "ssl_tile_target"))
def lightgcn_forward(user_w, item_w, norm_adj, sub_graph1, sub_graph2,
                     users, items, neg_items, *, n_layers,
                     gcn_tile_target=_GCN_TILE_TARGET,
                     ssl_tile_target=_SSL_TILE_TARGET):
    num_users, d = user_w.shape
    num_items = item_w.shape[0]
    n = num_users + num_items
    np_, tm, tk = _gcn_tiles(n, gcn_tile_target)
    dp = _round_up(max(d, _LANE), _LANE)  # lane-dense feature dim

    ego = jnp.concatenate([user_w, item_w], axis=0).astype(jnp.float32)
    ego_p = _pad2(ego, np_, dp)

    def prep_adj(a):
        # bf16 BEFORE padding: no f32 (np_, np_) temp, half the prep traffic.
        return _pad2(a.astype(jnp.bfloat16), np_, np_)

    adj0, adj1, adj2 = prep_adj(norm_adj), prep_adj(sub_graph1), prep_adj(sub_graph2)

    def propagate(adj_bf16, normalize):
        if n_layers == 0:  # degenerate case: mean == ego
            out = ego_p
            if normalize:
                ssq = jnp.sum(out * out, axis=1, keepdims=True)
                out = out * jax.lax.rsqrt(jnp.maximum(ssq, 1e-24))
            return out
        cur = ego_p.astype(jnp.bfloat16)
        part = ego_p
        for _ in range(n_layers - 1):
            cur, part = gcn_layer_pallas(adj_bf16, cur, part, tm, tk)
        return gcn_final_pallas(adj_bf16, cur, part, n_layers, normalize, tm, tk)

    all0 = propagate(adj0, normalize=False)   # norm_adj  -> un-normalized mean
    all1 = propagate(adj1, normalize=True)    # sub_graph1 -> fused F.normalize
    all2 = propagate(adj2, normalize=True)    # sub_graph2 -> fused F.normalize

    ue, ie = all0[:num_users], all0[num_users:n]
    ue1, ie1 = all1[:num_users], all1[num_users:n]
    ue2, ie2 = all2[:num_users], all2[num_users:n]

    u = jnp.take(ue, users, axis=0)
    i = jnp.take(ie, items, axis=0)
    ng = jnp.take(ie, neg_items, axis=0)
    u1 = jnp.take(ue1, users, axis=0)
    i1 = jnp.take(ie1, items, axis=0)
    u2 = jnp.take(ue2, users, axis=0)
    i2 = jnp.take(ie2, items, axis=0)

    # Batch-size dot products: plain JAX (a kernel here is pure launch overhead).
    sup_logits = jnp.sum(u * i, axis=-1) - jnp.sum(u * ng, axis=-1)

    ssl_logits_user = ssl_logits_pallas(u1, u2, ue2, ssl_tile_target)
    ssl_logits_item = ssl_logits_pallas(i1, i2, ie2, ssl_tile_target)
    return sup_logits, ssl_logits_user, ssl_logits_item


# ----------------------------------------------------------------------------
# Pure-JAX reference (f32 everywhere) for verification.
# ----------------------------------------------------------------------------
def lightgcn_forward_ref(user_w, item_w, norm_adj, sub1, sub2,
                         users, items, neg_items, n_layers):
    num_users = user_w.shape[0]
    ego = jnp.concatenate([user_w, item_w], axis=0)

    def gcn(adj):
        accs = [ego]
        cur = ego
        for _ in range(n_layers):
            cur = adj @ cur
            accs.append(cur)
        all_emb = jnp.mean(jnp.stack(accs, axis=1), axis=1)
        return all_emb[:num_users], all_emb[num_users:]

    def l2n(x):
        nrm = jnp.sqrt(jnp.sum(x * x, axis=1, keepdims=True))
        return x / jnp.maximum(nrm, 1e-12)

    ue, ie = gcn(norm_adj)
    ue1, ie1 = gcn(sub1)
    ue2, ie2 = gcn(sub2)
    ue1, ie1, ue2, ie2 = l2n(ue1), l2n(ie1), l2n(ue2), l2n(ie2)

    uemb, iemb, nemb = ue[users], ie[items], ie[neg_items]
    uemb1, iemb1, uemb2, iemb2 = ue1[users], ie1[items], ue2[users], ie2[items]

    sup = jnp.sum(uemb * iemb, -1) - jnp.sum(uemb * nemb, -1)
    ssl_u = uemb1 @ ue2.T - jnp.sum(uemb1 * uemb2, -1)[:, None]
    ssl_i = iemb1 @ ie2.T - jnp.sum(iemb1 * iemb2, -1)[:, None]
    return sup, ssl_u, ssl_i


# ----------------------------------------------------------------------------
# Main
# ----------------------------------------------------------------------------
if __name__ == "__main__":
    import numpy as np

    def run_case(num_users, num_items, embed_dim, n_layers, batch, seed,
                 gcn_tile_target, ssl_tile_target):
        N = num_users + num_items
        key = jax.random.PRNGKey(seed)
        k_u, k_i, k_a0, k_a1, k_a2, k_us, k_it, k_ng = jax.random.split(key, 8)

        user_w = 0.1 * jax.random.normal(k_u, (num_users, embed_dim), jnp.float32)
        item_w = 0.1 * jax.random.normal(k_i, (num_items, embed_dim), jnp.float32)

        def make_norm_adj(k):
            a = (jax.random.uniform(k, (N, N)) > 0.8).astype(jnp.float32)
            a = jnp.maximum(a, a.T)
            deg = jnp.sum(a, axis=1, keepdims=True)
            d_inv = jnp.where(deg > 0, 1.0 / jnp.sqrt(deg), 0.0)
            return d_inv * a * d_inv.T  # symmetric normalized dense adjacency

        norm_adj = make_norm_adj(k_a0)
        sub_graph1 = make_norm_adj(k_a1)
        sub_graph2 = make_norm_adj(k_a2)

        users = jax.random.randint(k_us, (batch,), 0, num_users, jnp.int32)
        items = jax.random.randint(k_it, (batch,), 0, num_items, jnp.int32)
        neg_items = jax.random.randint(k_ng, (batch,), 0, num_items, jnp.int32)

        sup, ssl_u, ssl_i = lightgcn_forward(
            user_w, item_w, norm_adj, sub_graph1, sub_graph2,
            users, items, neg_items, n_layers=n_layers,
            gcn_tile_target=gcn_tile_target, ssl_tile_target=ssl_tile_target)
        jax.block_until_ready((sup, ssl_u, ssl_i))

        assert sup.shape == (batch,)
        assert ssl_u.shape == (batch, num_users)
        assert ssl_i.shape == (batch, num_items)

        sup_r, ssl_u_r, ssl_i_r = lightgcn_forward_ref(
            user_w, item_w, norm_adj, sub_graph1, sub_graph2,
            users, items, neg_items, n_layers)

        # Tolerances account for the deliberate bf16 adjacency / operand / ssl
        # catalog casts (f32 accumulation everywhere).
        np.testing.assert_allclose(np.asarray(sup), np.asarray(sup_r),
                                   rtol=5e-2, atol=3e-2)
        np.testing.assert_allclose(np.asarray(ssl_u), np.asarray(ssl_u_r),
                                   rtol=5e-2, atol=3e-2)
        np.testing.assert_allclose(np.asarray(ssl_i), np.asarray(ssl_i_r),
                                   rtol=5e-2, atol=3e-2)

    # Case 1: small shapes consistent with the module (single-tile path).
    run_case(num_users=24, num_items=40, embed_dim=32, n_layers=2, batch=8,
             seed=0, gcn_tile_target=_GCN_TILE_TARGET,
             ssl_tile_target=_SSL_TILE_TARGET)

    # Case 2: N > tile and N not a tile multiple -> exercises the multi-step
    # k-reduction (pl.when init/finalize, VMEM accumulator residency) and the
    # multi-tile ssl catalog path.
    run_case(num_users=150, num_items=170, embed_dim=32, n_layers=2, batch=8,
             seed=1, gcn_tile_target=128, ssl_tile_target=128)

    print("KERNEL_OK")
</pallas_src>

<mosaic_0001>
module attributes {stable_mosaic.version = 11 : i64} {
  func.func @gcn_final_kernel(%arg0: i32, %arg1: i32, %arg2: memref<128x128xbf16, #tpu.memory_space<vmem>>, %arg3: memref<128x128xbf16, #tpu.memory_space<vmem>>, %arg4: memref<128x128xf32, #tpu.memory_space<vmem>>, %arg5: memref<128x128xf32, #tpu.memory_space<vmem>>, %arg6: memref<128x128xf32, #tpu.memory_space<vmem>>) attributes {dimension_semantics = [#tpu.dimension_semantics<parallel>, #tpu.dimension_semantics<arbitrary>], iteration_bounds = array<i64: 1, 1>, scalar_prefetch = 0 : i64, scratch_operands = 1 : i64, tpu.core_type = #tpu.core_type<tc>, window_params = [{transform_indices = @transform_0, window_bounds = array<i64: 128, 128>}, {transform_indices = @transform_1, window_bounds = array<i64: 128, 128>}, {transform_indices = @transform_2, window_bounds = array<i64: 128, 128>}, {transform_indices = @transform_3, window_bounds = array<i64: 128, 128>}]} {
    %c0_i32 = arith.constant 0 : i32
    %0 = arith.cmpi eq, %arg1, %c0_i32 : i32
    %1 = arith.extui %0 : i1 to i32
    %c0_i32_0 = arith.constant 0 : i32
    %2 = arith.cmpi ne, %1, %c0_i32_0 : i32
    scf.if %2 {
      %cst_10 = arith.constant 0.000000e+00 : f32
      %12 = vector.broadcast %cst_10 : f32 to vector<128x128xf32>
      %c0_11 = arith.constant 0 : index
      %c0_12 = arith.constant 0 : index
      %13 = vector.load %arg6[%c0_11, %c0_12] : memref<128x128xf32, #tpu.memory_space<vmem>>, vector<128x128xf32>
      tpu.vector_store %arg6[%c0_11, %c0_12], %12 {strides = array<i32>} : memref<128x128xf32, #tpu.memory_space<vmem>>, vector<128x128xf32>,
    } else {
    }
    %c0 = arith.constant 0 : index
    %c0_1 = arith.constant 0 : index
    %3 = vector.load %arg6[%c0, %c0_1] : memref<128x128xf32, #tpu.memory_space<vmem>>, vector<128x128xf32>
    %c0_2 = arith.constant 0 : index
    %c0_3 = arith.constant 0 : index
    %4 = vector.load %arg2[%c0_2, %c0_3] : memref<128x128xbf16, #tpu.memory_space<vmem>>, vector<128x128xbf16>
    %c0_4 = arith.constant 0 : index
    %c0_5 = arith.constant 0 : index
    %5 = vector.load %arg3[%c0_4, %c0_5] : memref<128x128xbf16, #tpu.memory_space<vmem>>, vector<128x128xbf16>
    %cst = arith.constant dense<0.000000e+00> : vector<128x128xf32>
    %6 = tpu.matmul %4, %5, %cst {dimension_numbers = #tpu.dot_dimension_numbers<[1], [0], [0], [1], [0, 0, 1, 1], [], []>} : vector<128x128xbf16>, vector<128x128xbf16>, vector<128x128xf32> -> vector<128x128xf32>
    %7 = arith.addf %3, %6 : vector<128x128xf32>
    %c0_6 = arith.constant 0 : index
    %c0_7 = arith.constant 0 : index
    %8 = vector.load %arg6[%c0_6, %c0_7] : memref<128x128xf32, #tpu.memory_space<vmem>>, vector<128x128xf32>
    tpu.vector_store %arg6[%c0_6, %c0_7], %7 {strides = array<i32>} : memref<128x128xf32, #tpu.memory_space<vmem>>, vector<128x128xf32>,
    %c0_i32_8 = arith.constant 0 : i32
    %9 = arith.cmpi eq, %arg1, %c0_i32_8 : i32
    %10 = arith.extui %9 : i1 to i32
    %c0_i32_9 = arith.constant 0 : i32
    %11 = arith.cmpi ne, %10, %c0_i32_9 : i32
    scf.if %11 {
      %c0_10 = arith.constant 0 : index
      %c0_11 = arith.constant 0 : index
      %12 = vector.load %arg4[%c0_10, %c0_11] : memref<128x128xf32, #tpu.memory_space<vmem>>, vector<128x128xf32>
      %c0_12 = arith.constant 0 : index
      %c0_13 = arith.constant 0 : index
      %13 = vector.load %arg6[%c0_12, %c0_13] : memref<128x128xf32, #tpu.memory_space<vmem>>, vector<128x128xf32>
      %14 = arith.addf %12, %13 : vector<128x128xf32>
      %cst_14 = arith.constant 0.333333343 : f32
      %15 = vector.broadcast %cst_14 : f32 to vector<128x128xf32>
      %16 = arith.mulf %14, %15 : vector<128x128xf32>
      %c0_15 = arith.constant 0 : index
      %c0_16 = arith.constant 0 : index
      %17 = vector.load %arg5[%c0_15, %c0_16] : memref<128x128xf32, #tpu.memory_space<vmem>>, vector<128x128xf32>
      tpu.vector_store %arg5[%c0_15, %c0_16], %16 {strides = array<i32>} : memref<128x128xf32, #tpu.memory_space<vmem>>, vector<128x128xf32>,
    } else {
    }
    return
  }
  func.func @transform_0(%arg0: i32, %arg1: i32) -> (i32, i32) {
    %c0_i32 = arith.constant 0 : i32
    return %arg0, %arg1 : i32, i32
  }
  func.func @transform_1(%arg0: i32, %arg1: i32) -> (i32, i32) {
    %c0_i32 = arith.constant 0 : i32
    %c0_i32_0 = arith.constant 0 : i32
    return %arg1, %c0_i32 : i32, i32
  }
  func.func @transform_2(%arg0: i32, %arg1: i32) -> (i32, i32) {
    %c0_i32 = arith.constant 0 : i32
    %c0_i32_0 = arith.constant 0 : i32
    return %arg0, %c0_i32 : i32, i32
  }
  func.func @transform_3(%arg0: i32, %arg1: i32) -> (i32, i32) {
    %c0_i32 = arith.constant 0 : i32
    %c0_i32_0 = arith.constant 0 : i32
    return %arg0, %c0_i32 : i32, i32
  }
}

module attributes {stable_mosaic.version = 11 : i64} {
  func.func @gcn_layer_kernel(%arg0: i32, %arg1: i32, %arg2: memref<128x128xbf16, #tpu.memory_space<vmem>>, %arg3: memref<128x128xbf16, #tpu.memory_space<vmem>>, %arg4: memref<128x128xf32, #tpu.memory_space<vmem>>, %arg5: memref<128x128xbf16, #tpu.memory_space<vmem>>, %arg6: memref<128x128xf32, #tpu.memory_space<vmem>>, %arg7: memref<128x128xf32, #tpu.memory_space<vmem>>) attributes {dimension_semantics = [#tpu.dimension_semantics<parallel>, #tpu.dimension_semantics<arbitrary>], iteration_bounds = array<i64: 1, 1>, scalar_prefetch = 0 : i64, scratch_operands = 1 : i64, tpu.core_type = #tpu.core_type<tc>, window_params = [{transform_indices = @transform_0, window_bounds = array<i64: 128, 128>}, {transform_indices = @transform_1, window_bounds = array<i64: 128, 128>}, {transform_indices = @transform_2, window_bounds = array<i64: 128, 128>}, {transform_indices = @transform_3, window_bounds = array<i64: 128, 128>}, {transform_indices = @transform_4, window_bounds = array<i64: 128, 128>}]} {
    %c0_i32 = arith.constant 0 : i32
    %0 = arith.cmpi eq, %arg1, %c0_i32 : i32
    %1 = arith.extui %0 : i1 to i32
    %c0_i32_0 = arith.constant 0 : i32
    %2 = arith.cmpi ne, %1, %c0_i32_0 : i32
    scf.if %2 {
      %cst_10 = arith.constant 0.000000e+00 : f32
      %12 = vector.broadcast %cst_10 : f32 to vector<128x128xf32>
      %c0_11 = arith.constant 0 : index
      %c0_12 = arith.constant 0 : index
      %13 = vector.load %arg7[%c0_11, %c0_12] : memref<128x128xf32, #tpu.memory_space<vmem>>, vector<128x128xf32>
      tpu.vector_store %arg7[%c0_11, %c0_12], %12 {strides = array<i32>} : memref<128x128xf32, #tpu.memory_space<vmem>>, vector<128x128xf32>,
    } else {
    }
    %c0 = arith.constant 0 : index
    %c0_1 = arith.constant 0 : index
    %3 = vector.load %arg7[%c0, %c0_1] : memref<128x128xf32, #tpu.memory_space<vmem>>, vector<128x128xf32>
    %c0_2 = arith.constant 0 : index
    %c0_3 = arith.constant 0 : index
    %4 = vector.load %arg2[%c0_2, %c0_3] : memref<128x128xbf16, #tpu.memory_space<vmem>>, vector<128x128xbf16>
    %c0_4 = arith.constant 0 : index
    %c0_5 = arith.constant 0 : index
    %5 = vector.load %arg3[%c0_4, %c0_5] : memref<128x128xbf16, #tpu.memory_space<vmem>>, vector<128x128xbf16>
    %cst = arith.constant dense<0.000000e+00> : vector<128x128xf32>
    %6 = tpu.matmul %4, %5, %cst {dimension_numbers = #tpu.dot_dimension_numbers<[1], [0], [0], [1], [0, 0, 1, 1], [], []>} : vector<128x128xbf16>, vector<128x128xbf16>, vector<128x128xf32> -> vector<128x128xf32>
    %7 = arith.addf %3, %6 : vector<128x128xf32>
    %c0_6 = arith.constant 0 : index
    %c0_7 = arith.constant 0 : index
    %8 = vector.load %arg7[%c0_6, %c0_7] : memref<128x128xf32, #tpu.memory_space<vmem>>, vector<128x128xf32>
    tpu.vector_store %arg7[%c0_6, %c0_7], %7 {strides = array<i32>} : memref<128x128xf32, #tpu.memory_space<vmem>>, vector<128x128xf32>,
    %c0_i32_8 = arith.constant 0 : i32
    %9 = arith.cmpi eq, %arg1, %c0_i32_8 : i32
    %10 = arith.extui %9 : i1 to i32
    %c0_i32_9 = arith.constant 0 : i32
    %11 = arith.cmpi ne, %10, %c0_i32_9 : i32
    scf.if %11 {
      %c0_10 = arith.constant 0 : index
      %c0_11 = arith.constant 0 : index
      %12 = vector.load %arg7[%c0_10, %c0_11] : memref<128x128xf32, #tpu.memory_space<vmem>>, vector<128x128xf32>
      %13 = arith.truncf %12 : vector<128x128xf32> to vector<128x128xbf16>
      %c0_12 = arith.constant 0 : index
      %c0_13 = arith.constant 0 : index
      %14 = vector.load %arg5[%c0_12, %c0_13] : memref<128x128xbf16, #tpu.memory_space<vmem>>, vector<128x128xbf16>
      tpu.vector_store %arg5[%c0_12, %c0_13], %13 {strides = array<i32>} : memref<128x128xbf16, #tpu.memory_space<vmem>>, vector<128x128xbf16>,
      %c0_14 = arith.constant 0 : index
      %c0_15 = arith.constant 0 : index
      %15 = vector.load %arg4[%c0_14, %c0_15] : memref<128x128xf32, #tpu.memory_space<vmem>>, vector<128x128xf32>
      %16 = arith.addf %15, %12 : vector<128x128xf32>
      %c0_16 = arith.constant 0 : index
      %c0_17 = arith.constant 0 : index
      %17 = vector.load %arg6[%c0_16, %c0_17] : memref<128x128xf32, #tpu.memory_space<vmem>>, vector<128x128xf32>
      tpu.vector_store %arg6[%c0_16, %c0_17], %16 {strides = array<i32>} : memref<128x128xf32, #tpu.memory_space<vmem>>, vector<128x128xf32>,
    } else {
    }
    return
  }
  func.func @transform_0(%arg0: i32, %arg1: i32) -> (i32, i32) {
    %c0_i32 = arith.constant 0 : i32
    return %arg0, %arg1 : i32, i32
  }
  func.func @transform_1(%arg0: i32, %arg1: i32) -> (i32, i32) {
    %c0_i32 = arith.constant 0 : i32
    %c0_i32_0 = arith.constant 0 : i32
    return %arg1, %c0_i32 : i32, i32
  }
  func.func @transform_2(%arg0: i32, %arg1: i32) -> (i32, i32) {
    %c0_i32 = arith.constant 0 : i32
    %c0_i32_0 = arith.constant 0 : i32
    return %arg0, %c0_i32 : i32, i32
  }
  func.func @transform_3(%arg0: i32, %arg1: i32) -> (i32, i32) {
    %c0_i32 = arith.constant 0 : i32
    %c0_i32_0 = arith.constant 0 : i32
    return %arg0, %c0_i32 : i32, i32
  }
  func.func @transform_4(%arg0: i32, %arg1: i32) -> (i32, i32) {
    %c0_i32 = arith.constant 0 : i32
    %c0_i32_0 = arith.constant 0 : i32
    return %arg0, %c0_i32 : i32, i32
  }
}

module attributes {stable_mosaic.version = 11 : i64} {
  func.func @gcn_final_kernel(%arg0: i32, %arg1: i32, %arg2: memref<128x128xbf16, #tpu.memory_space<vmem>>, %arg3: memref<128x128xbf16, #tpu.memory_space<vmem>>, %arg4: memref<128x128xf32, #tpu.memory_space<vmem>>, %arg5: memref<128x128xf32, #tpu.memory_space<vmem>>, %arg6: memref<128x128xf32, #tpu.memory_space<vmem>>) attributes {dimension_semantics = [#tpu.dimension_semantics<parallel>, #tpu.dimension_semantics<arbitrary>], iteration_bounds = array<i64: 1, 1>, scalar_prefetch = 0 : i64, scratch_operands = 1 : i64, tpu.core_type = #tpu.core_type<tc>, window_params = [{transform_indices = @transform_0, window_bounds = array<i64: 128, 128>}, {transform_indices = @transform_1, window_bounds = array<i64: 128, 128>}, {transform_indices = @transform_2, window_bounds = array<i64: 128, 128>}, {transform_indices = @transform_3, window_bounds = array<i64: 128, 128>}]} {
    %c0_i32 = arith.constant 0 : i32
    %0 = arith.cmpi eq, %arg1, %c0_i32 : i32
    %1 = arith.extui %0 : i1 to i32
    %c0_i32_0 = arith.constant 0 : i32
    %2 = arith.cmpi ne, %1, %c0_i32_0 : i32
    scf.if %2 {
      %cst_10 = arith.constant 0.000000e+00 : f32
      %12 = vector.broadcast %cst_10 : f32 to vector<128x128xf32>
      %c0_11 = arith.constant 0 : index
      %c0_12 = arith.constant 0 : index
      %13 = vector.load %arg6[%c0_11, %c0_12] : memref<128x128xf32, #tpu.memory_space<vmem>>, vector<128x128xf32>
      tpu.vector_store %arg6[%c0_11, %c0_12], %12 {strides = array<i32>} : memref<128x128xf32, #tpu.memory_space<vmem>>, vector<128x128xf32>,
    } else {
    }
    %c0 = arith.constant 0 : index
    %c0_1 = arith.constant 0 : index
    %3 = vector.load %arg6[%c0, %c0_1] : memref<128x128xf32, #tpu.memory_space<vmem>>, vector<128x128xf32>
    %c0_2 = arith.constant 0 : index
    %c0_3 = arith.constant 0 : index
    %4 = vector.load %arg2[%c0_2, %c0_3] : memref<128x128xbf16, #tpu.memory_space<vmem>>, vector<128x128xbf16>
    %c0_4 = arith.constant 0 : index
    %c0_5 = arith.constant 0 : index
    %5 = vector.load %arg3[%c0_4, %c0_5] : memref<128x128xbf16, #tpu.memory_space<vmem>>, vector<128x128xbf16>
    %cst = arith.constant dense<0.000000e+00> : vector<128x128xf32>
    %6 = tpu.matmul %4, %5, %cst {dimension_numbers = #tpu.dot_dimension_numbers<[1], [0], [0], [1], [0, 0, 1, 1], [], []>} : vector<128x128xbf16>, vector<128x128xbf16>, vector<128x128xf32> -> vector<128x128xf32>
    %7 = arith.addf %3, %6 : vector<128x128xf32>
    %c0_6 = arith.constant 0 : index
    %c0_7 = arith.constant 0 : index
    %8 = vector.load %arg6[%c0_6, %c0_7] : memref<128x128xf32, #tpu.memory_space<vmem>>, vector<128x128xf32>
    tpu.vector_store %arg6[%c0_6, %c0_7], %7 {strides = array<i32>} : memref<128x128xf32, #tpu.memory_space<vmem>>, vector<128x128xf32>,
    %c0_i32_8 = arith.constant 0 : i32
    %9 = arith.cmpi eq, %arg1, %c0_i32_8 : i32
    %10 = arith.extui %9 : i1 to i32
    %c0_i32_9 = arith.constant 0 : i32
    %11 = arith.cmpi ne, %10, %c0_i32_9 : i32
    scf.if %11 {
      %c0_10 = arith.constant 0 : index
      %c0_11 = arith.constant 0 : index
      %12 = vector.load %arg4[%c0_10, %c0_11] : memref<128x128xf32, #tpu.memory_space<vmem>>, vector<128x128xf32>
      %c0_12 = arith.constant 0 : index
      %c0_13 = arith.constant 0 : index
      %13 = vector.load %arg6[%c0_12, %c0_13] : memref<128x128xf32, #tpu.memory_space<vmem>>, vector<128x128xf32>
      %14 = arith.addf %12, %13 : vector<128x128xf32>
      %cst_14 = arith.constant 0.333333343 : f32
      %15 = vector.broadcast %cst_14 : f32 to vector<128x128xf32>
      %16 = arith.mulf %14, %15 : vector<128x128xf32>
      %17 = arith.mulf %16, %16 : vector<128x128xf32>
      %cst_15 = arith.constant dense<0.000000e+00> : vector<128xf32>
      %18 = vector.multi_reduction <add>, %17, %cst_15 [1] : vector<128x128xf32> to vector<128xf32>
      %19 = vector.shape_cast %18 : vector<128xf32> to vector<128x1xf32>
      %cst_16 = arith.constant 1.000000e-24 : f32
      %20 = vector.broadcast %cst_16 : f32 to vector<128x1xf32>
      %21 = arith.maximumf %19, %20 : vector<128x1xf32>
      %22 = math.rsqrt %21 : vector<128x1xf32>
      %23 = vector.broadcast %22 : vector<128x1xf32> to vector<128x128xf32>
      %24 = arith.mulf %16, %23 : vector<128x128xf32>
      %c0_17 = arith.constant 0 : index
      %c0_18 = arith.constant 0 : index
      %25 = vector.load %arg5[%c0_17, %c0_18] : memref<128x128xf32, #tpu.memory_space<vmem>>, vector<128x128xf32>
      tpu.vector_store %arg5[%c0_17, %c0_18], %24 {strides = array<i32>} : memref<128x128xf32, #tpu.memory_space<vmem>>, vector<128x128xf32>,
    } else {
    }
    return
  }
  func.func @transform_0(%arg0: i32, %arg1: i32) -> (i32, i32) {
    %c0_i32 = arith.constant 0 : i32
    return %arg0, %arg1 : i32, i32
  }
  func.func @transform_1(%arg0: i32, %arg1: i32) -> (i32, i32) {
    %c0_i32 = arith.constant 0 : i32
    %c0_i32_0 = arith.constant 0 : i32
    return %arg1, %c0_i32 : i32, i32
  }
  func.func @transform_2(%arg0: i32, %arg1: i32) -> (i32, i32) {
    %c0_i32 = arith.constant 0 : i32
    %c0_i32_0 = arith.constant 0 : i32
    return %arg0, %c0_i32 : i32, i32
  }
  func.func @transform_3(%arg0: i32, %arg1: i32) -> (i32, i32) {
    %c0_i32 = arith.constant 0 : i32
    %c0_i32_0 = arith.constant 0 : i32
    return %arg0, %c0_i32 : i32, i32
  }
}

module attributes {stable_mosaic.version = 11 : i64} {
  func.func @ssl_kernel(%arg0: i32, %arg1: memref<8x128xbf16, #tpu.memory_space<vmem>>, %arg2: memref<8x1xf32, #tpu.memory_space<vmem>>, %arg3: memref<128x128xbf16, #tpu.memory_space<vmem>>, %arg4: memref<8x128xf32, #tpu.memory_space<vmem>>) attributes {dimension_semantics = [#tpu.dimension_semantics<parallel>], iteration_bounds = array<i64: 1>, scalar_prefetch = 0 : i64, scratch_operands = 0 : i64, tpu.core_type = #tpu.core_type<tc>, window_params = [{pipeline_mode = #tpu.pipeline_mode<synchronous>, transform_indices = @transform_0, window_bounds = array<i64: 8, 128>}, {pipeline_mode = #tpu.pipeline_mode<synchronous>, transform_indices = @transform_1, window_bounds = array<i64: 8, 1>}, {transform_indices = @transform_2, window_bounds = array<i64: 128, 128>}, {transform_indices = @transform_3, window_bounds = array<i64: 8, 128>}]} {
    %c0 = arith.constant 0 : index
    %c0_0 = arith.constant 0 : index
    %0 = vector.load %arg1[%c0, %c0_0] : memref<8x128xbf16, #tpu.memory_space<vmem>>, vector<8x128xbf16>
    %c0_1 = arith.constant 0 : index
    %c0_2 = arith.constant 0 : index
    %1 = vector.load %arg3[%c0_1, %c0_2] : memref<128x128xbf16, #tpu.memory_space<vmem>>, vector<128x128xbf16>
    %cst = arith.constant dense<0.000000e+00> : vector<8x128xf32>
    %2 = tpu.matmul %0, %1, %cst {dimension_numbers = #tpu.dot_dimension_numbers<[1], [1], [0], [0], [0, 0, 1, 0], [], []>} : vector<8x128xbf16>, vector<128x128xbf16>, vector<8x128xf32> -> vector<8x128xf32>
    %c0_3 = arith.constant 0 : index
    %c0_4 = arith.constant 0 : index
    %3 = vector.load %arg2[%c0_3, %c0_4] : memref<8x1xf32, #tpu.memory_space<vmem>>, vector<8x1xf32>
    %4 = vector.broadcast %3 : vector<8x1xf32> to vector<8x128xf32>
    %5 = arith.subf %2, %4 : vector<8x128xf32>
    %c0_5 = arith.constant 0 : index
    %c0_6 = arith.constant 0 : index
    %6 = vector.load %arg4[%c0_5, %c0_6] : memref<8x128xf32, #tpu.memory_space<vmem>>, vector<8x128xf32>
    tpu.vector_store %arg4[%c0_5, %c0_6], %5 {strides = array<i32>} : memref<8x128xf32, #tpu.memory_space<vmem>>, vector<8x128xf32>,
    return
  }
  func.func @transform_0(%arg0: i32) -> (i32, i32) {
    %c0_i32 = arith.constant 0 : i32
    %c0_i32_0 = arith.constant 0 : i32
    %c0_i32_1 = arith.constant 0 : i32
    return %c0_i32, %c0_i32_0 : i32, i32
  }
  func.func @transform_1(%arg0: i32) -> (i32, i32) {
    %c0_i32 = arith.constant 0 : i32
    %c0_i32_0 = arith.constant 0 : i32
    %c0_i32_1 = arith.constant 0 : i32
    return %c0_i32, %c0_i32_0 : i32, i32
  }
  func.func @transform_2(%arg0: i32) -> (i32, i32) {
    %c0_i32 = arith.constant 0 : i32
    %c0_i32_0 = arith.constant 0 : i32
    return %arg0, %c0_i32 : i32, i32
  }
  func.func @transform_3(%arg0: i32) -> (i32, i32) {
    %c0_i32 = arith.constant 0 : i32
    %c0_i32_0 = arith.constant 0 : i32
    return %c0_i32, %arg0 : i32, i32
  }
}

</mosaic_0001>

<bundles_post_ra>
// kernel: sub.1
= control target key start
LH: loop header
LB: loop body
LE: loop exit
PB: predicated region body
PF: predicated region fallthrough
CT: control target
= control target key end

     0   :  { %3 = vsyncpa [#allocation1], 0  ;;  %s50_s13 = smov [#allocation0]   ;;  %s75_s0 = inlined_call_operand.vmem [shape: f32[8], index: 0, kind: input, shape index: {}]   ;;  %s76_s1 = inlined_call_operand.vmem [shape: f32[8], index: 1, kind: input, shape index: {}]   ;;  %s77_s2 = inlined_call_operand.hbm [shape: f32[8], index: 2, kind: output, shape index: {}]  }
   0x1   :  { %v4_v0 = vld [vmem:[%s75_s0] sm:$0x1]  ;;  %s16_s2 = sshll.u32 %s77_s2, 4  ;;  %s14_s14 = sshll.u32 %s50_s13, 4  ;;  %s17_s2 = int_to_ptr.hbm [resolvable:$true] %s16_s2  ;;  %s15_s14 = int_to_ptr.vmem [resolvable:$true] %s14_s14 }
   0x2   :  { %v5_v1 = vld [vmem:[%s76_s1] sm:$0x1] }
   0x3   :  { %v8_v2 = vsub.f32 %v4_v0, %v5_v1 }
   0x5   :  { %10 = vst [vmem:[#allocation0] sm:$0x1] %v8_v2 }
   0x6   :  { %19 = dma.vmem_to_hbm [thread:$0]  %s15_s14, 16, %s17_s2, [#allocation1]  }
   0x7   :  { %48 = dma.done.wait [#allocation1], 16  }
   0x8   :  { %49 = vsyncadd [#allocation1], 4294967280 }
   0x9   :  { %22 = vsyncpa [#allocation1], 1 }

// kernel: lightgcn_forward.8
= control target key start
LH: loop header
LB: loop body
LE: loop exit
PB: predicated region body
PF: predicated region fallthrough
CT: control target
= control target key end

     0   :  { %s712_s1 = inlined_call_operand.vmem [shape: bf16[128,128], index: 1, kind: input, shape index: {}]   ;;  %s713_s0 = inlined_call_operand.vmem [shape: bf16[128,128], index: 0, kind: input, shape index: {}]   ;;  %s714_s2 = inlined_call_operand.vmem [shape: f32[128,128], index: 2, kind: input, shape index: {}, may-alias: {2,4}]   ;;  %s715_s4 = inlined_call_operand.vmem [shape: f32[128,128], index: 4, kind: output, shape index: {1}, may-alias: {2,4}]   ;;  %s716_s3 = inlined_call_operand.vmem [shape: bf16[128,128], index: 3, kind: output, shape index: {0}]  }
   0x1   :  { %v447_v0 = vld [vmem:[%s712_s1 + $0x38] sm:$0xff]  ;;  %v446_v1 = vld [vmem:[%s712_s1 + $0x30] sm:$0xff]  ;;  %v445_v2 = vld [vmem:[%s712_s1 + $0x28] sm:$0xff] }
   0x2   :  { %180 = vmatpush.bf16.msra.mxu0 %v447_v0  ;;  %495 = vmatpush.bf16.msra.mxu1 %v447_v0  ;;  %v444_v3 = vld [vmem:[%s712_s1 + $0x20] sm:$0xff]  ;;  %v443_v4 = vld [vmem:[%s712_s1 + $0x18] sm:$0xff]  ;;  %v442_v5 = vld [vmem:[%s712_s1 + $0x10] sm:$0xff] }
   0x3   :  { %496 = vmatpush.bf16.msra.mxu2 %v447_v0  ;;  %497 = vmatpush.bf16.msra.mxu3 %v447_v0  ;;  %v441_v6 = vld [vmem:[%s712_s1 + $0x8] sm:$0xff]  ;;  %v440_v7 = vld [vmem:[%s712_s1] sm:$0xff]  ;;  %v434_v9 = vld [vmem:[%s713_s0 + $0x10] sm:$0xff] }
   0x4   :  { %v432_v8 = vld [vmem:[%s713_s0] sm:$0xff]  ;;  %v438_v11 = vld [vmem:[%s713_s0 + $0x30] sm:$0xff]  ;;  %v433_v12 = vld [vmem:[%s713_s0 + $0x8] sm:$0xff] }
   0x5   :  { %v436_v10 = vld [vmem:[%s713_s0 + $0x20] sm:$0xff]  ;;  %v435_v13 = vld [vmem:[%s713_s0 + $0x18] sm:$0xff]  ;;  %v437_v14 = vld [vmem:[%s713_s0 + $0x28] sm:$0xff] }
   0x6   :  { %181 = vmatpush.bf16.msra.mxu0 %v446_v1  ;;  %498 = vmatpush.bf16.msra.mxu1 %v446_v1  ;;  %v439_v15 = vld [vmem:[%s713_s0 + $0x38] sm:$0xff]  ;;  %v312_v16 = vld [vmem:[%s714_s2] sm:$0xff] }
   0x7   :  { %499 = vmatpush.bf16.msra.mxu2 %v446_v1  ;;  %500 = vmatpush.bf16.msra.mxu3 %v446_v1  ;;  %v316_v17 = vld [vmem:[%s714_s2 + $0x20] sm:$0xff] }
   0xa   :  { %182 = vmatpush.bf16.msra.mxu0 %v445_v2  ;;  %501 = vmatpush.bf16.msra.mxu1 %v445_v2 }
   0xb   :  { %502 = vmatpush.bf16.msra.mxu2 %v445_v2  ;;  %503 = vmatpush.bf16.msra.mxu3 %v445_v2 }
   0xe   :  { %183 = vmatpush.bf16.msra.mxu0 %v444_v3  ;;  %504 = vmatpush.bf16.msra.mxu1 %v444_v3 }
   0xf   :  { %505 = vmatpush.bf16.msra.mxu2 %v444_v3  ;;  %506 = vmatpush.bf16.msra.mxu3 %v444_v3 }
  0x12   :  { %184 = vmatpush.bf16.msra.mxu0 %v443_v4  ;;  %507 = vmatpush.bf16.msra.mxu1 %v443_v4 }
  0x13   :  { %508 = vmatpush.bf16.msra.mxu2 %v443_v4  ;;  %509 = vmatpush.bf16.msra.mxu3 %v443_v4 }
  0x16   :  { %185 = vmatpush.bf16.msra.mxu0 %v442_v5  ;;  %510 = vmatpush.bf16.msra.mxu1 %v442_v5 }
  0x17   :  { %511 = vmatpush.bf16.msra.mxu2 %v442_v5  ;;  %512 = vmatpush.bf16.msra.mxu3 %v442_v5 }
  0x1a   :  { %186 = vmatpush.bf16.msra.mxu0 %v441_v6  ;;  %513 = vmatpush.bf16.msra.mxu1 %v441_v6 }
  0x1b   :  { %514 = vmatpush.bf16.msra.mxu2 %v441_v6  ;;  %515 = vmatpush.bf16.msra.mxu3 %v441_v6 }
  0x1e   :  { %187 = vmatpush.bf16.msra.mxu0 %v440_v7  ;;  %516 = vmatpush.bf16.msra.mxu1 %v440_v7 }
  0x1f   :  { %517 = vmatpush.bf16.msra.mxu2 %v440_v7  ;;  %518 = vmatpush.bf16.msra.mxu3 %v440_v7 }
  0x21   :  { %188 = vmatmul.bf16.vlgmr.msra.gmra.mxu0 %v432_v8  ;;  %198 = vmatmul.bf16.vlgmr.msra.gmra.mxu1 %v434_v9 }
  0x22   :  { %208 = vmatmul.bf16.vlgmr.msra.gmra.mxu2 %v436_v10  ;;  %218 = vmatmul.bf16.vlgmr.msra.gmra.mxu3 %v438_v11 }
  0x31   :  { %193 = vmatmul.bf16.gmra.mxu0 %v433_v12  ;;  %203 = vmatmul.bf16.gmra.mxu1 %v435_v13 }
  0x32   :  { %213 = vmatmul.bf16.gmra.mxu2 %v437_v14  ;;  %223 = vmatmul.bf16.gmra.mxu3 %v439_v15 }
  0x9e   :  { %v189_v18 = vpop.f32.mrf.mxu0  ;;  %v199_v19 = vpop.f32.mrf.mxu1 }
  0x9f   :  { %v328_v20 = vadd.f32 %v312_v16, %v189_v18  ;;  %v332_v21 = vadd.f32 %v316_v17, %v199_v19 }
  0xa1   :  { %344 = vst [vmem:[%s715_s4] sm:$0xff] %v328_v20 }
  0xa2   :  { %348 = vst [vmem:[%s715_s4 + $0x20] sm:$0xff] %v332_v21 }
  0xa5   :  { %v209_v25 = vpop.f32.mrf.mxu2  ;;  %v219_v26 = vpop.f32.mrf.mxu3 }
  0xa6   :  { %v191_v29 = vpop.f32.mrf.mxu0  ;;  %v201_v30 = vpop.f32.mrf.mxu1 }
  0xa7   :  { %v451_v32 = vpack.c.bf16 %v191_v29, %v189_v18  ;;  %v461_v34 = vpack.c.bf16 %v201_v30, %v199_v19 }
  0xa9   :  { %v320_v22 = vld [vmem:[%s714_s2 + $0x40] sm:$0xff]  ;;  %v313_v24 = vld [vmem:[%s714_s2 + $0x8] sm:$0xff]  ;;  %452 = vst [vmem:[%s716_s3] sm:$0xff] %v451_v32  }
  0xaa   :  { %v324_v23 = vld [vmem:[%s714_s2 + $0x60] sm:$0xff]  ;;  %v336_v27 = vadd.f32 %v320_v22, %v209_v25  ;;  %v317_v31 = vld [vmem:[%s714_s2 + $0x28] sm:$0xff]  ;;  %v329_v33 = vadd.f32 %v313_v24, %v191_v29  ;;  %489 = vst [vmem:[%s716_s3 + $0x10] sm:$0xff] %v461_v34  }
  0xab   :  { %v340_v28 = vadd.f32 %v324_v23, %v219_v26  ;;  %v333_v35 = vadd.f32 %v317_v31, %v201_v30 }
  0xac   :  { %352 = vst [vmem:[%s715_s4 + $0x40] sm:$0xff] %v336_v27 }
  0xad   :  { %356 = vst [vmem:[%s715_s4 + $0x60] sm:$0xff] %v340_v28  ;;  %v211_v38 = vpop.f32.mrf.mxu2  ;;  %v221_v39 = vpop.f32.mrf.mxu3 }
  0xae   :  { %345 = vst [vmem:[%s715_s4 + $0x8] sm:$0xff] %v329_v33  ;;  %v471_v41 = vpack.c.bf16 %v211_v38, %v209_v25  ;;  %v481_v43 = vpack.c.bf16 %v221_v39, %v219_v26  ;;  %v194_v44 = vpop.f32.mrf.mxu0  ;;  %v204_v45 = vpop.f32.mrf.mxu1 }
  0xb0   :  { %491 = vst [vmem:[%s716_s3 + $0x20] sm:$0xff] %v471_v41  }
  0xb1   :  { %493 = vst [vmem:[%s716_s3 + $0x30] sm:$0xff] %v481_v43  }
  0xb5   :  { %v321_v36 = vld [vmem:[%s714_s2 + $0x48] sm:$0xff]  ;;  %v214_v53 = vpop.f32.mrf.mxu2  ;;  %v224_v54 = vpop.f32.mrf.mxu3 }
  0xb6   :  { %v325_v37 = vld [vmem:[%s714_s2 + $0x68] sm:$0xff]  ;;  %v337_v42 = vadd.f32 %v321_v36, %v211_v38  ;;  %v196_v57 = vpop.f32.mrf.mxu0  ;;  %v206_v58 = vpop.f32.mrf.mxu1 }
  0xb7   :  { %349 = vst [vmem:[%s715_s4 + $0x28] sm:$0xff] %v333_v35  ;;  %v341_v47 = vadd.f32 %v325_v37, %v221_v39  ;;  %v456_v60 = vpack.c.bf16 %v196_v57, %v194_v44  ;;  %v466_v62 = vpack.c.bf16 %v206_v58, %v204_v45 }
  0xb9   :  { %488 = vst [vmem:[%s716_s3 + $0x8] sm:$0xff] %v456_v60  }
  0xba   :  { %490 = vst [vmem:[%s716_s3 + $0x18] sm:$0xff] %v466_v62  }
  0xbd   :  { %v216_v2 = vpop.f32.mrf.mxu2  ;;  %v226_v3 = vpop.f32.mrf.mxu3 }
  0xbe   :  { %v314_v40 = vld [vmem:[%s714_s2 + $0x10] sm:$0xff]  ;;  %v476_v4 = vpack.c.bf16 %v216_v2, %v214_v53  ;;  %v486_v6 = vpack.c.bf16 %v226_v3, %v224_v54 }
  0xbf   :  { %v318_v46 = vld [vmem:[%s714_s2 + $0x30] sm:$0xff]  ;;  %v330_v48 = vadd.f32 %v314_v40, %v194_v44 }
  0xc0   :  { %353 = vst [vmem:[%s715_s4 + $0x48] sm:$0xff] %v337_v42  ;;  %v334_v49 = vadd.f32 %v318_v46, %v204_v45 }
  0xc1   :  { %357 = vst [vmem:[%s715_s4 + $0x68] sm:$0xff] %v341_v47 }
  0xc2   :  { %492 = vst [vmem:[%s716_s3 + $0x28] sm:$0xff] %v476_v4  }
  0xc3   :  { %494 = vst [vmem:[%s716_s3 + $0x38] sm:$0xff] %v486_v6  }
  0xc8   :  { %v322_v50 = vld [vmem:[%s714_s2 + $0x50] sm:$0xff] }
  0xc9   :  { %v326_v51 = vld [vmem:[%s714_s2 + $0x70] sm:$0xff]  ;;  %v338_v55 = vadd.f32 %v322_v50, %v214_v53 }
  0xca   :  { %346 = vst [vmem:[%s715_s4 + $0x10] sm:$0xff] %v330_v48  ;;  %v342_v56 = vadd.f32 %v326_v51, %v224_v54 }
  0xd1   :  { %v315_v52 = vld [vmem:[%s714_s2 + $0x18] sm:$0xff] }
  0xd2   :  { %350 = vst [vmem:[%s715_s4 + $0x30] sm:$0xff] %v334_v49  ;;  %v331_v61 = vadd.f32 %v315_v52, %v196_v57 }
  0xd9   :  { %v319_v59 = vld [vmem:[%s714_s2 + $0x38] sm:$0xff] }
  0xda   :  { %354 = vst [vmem:[%s715_s4 + $0x50] sm:$0xff] %v338_v55  ;;  %v335_v63 = vadd.f32 %v319_v59, %v206_v58 }
  0xdb   :  { %358 = vst [vmem:[%s715_s4 + $0x70] sm:$0xff] %v342_v56 }
  0xdc   :  { %347 = vst [vmem:[%s715_s4 + $0x18] sm:$0xff] %v331_v61 }
  0xe3   :  { %v323_v0 = vld [vmem:[%s714_s2 + $0x58] sm:$0xff] }
  0xe4   :  { %v327_v1 = vld [vmem:[%s714_s2 + $0x78] sm:$0xff]  ;;  %v339_v5 = vadd.f32 %v323_v0, %v216_v2 }
  0xe5   :  { %351 = vst [vmem:[%s715_s4 + $0x38] sm:$0xff] %v335_v63  ;;  %v343_v7 = vadd.f32 %v327_v1, %v226_v3 }
  0xe6   :  { %355 = vst [vmem:[%s715_s4 + $0x58] sm:$0xff] %v339_v5 }
  0xe7   :  { %359 = vst [vmem:[%s715_s4 + $0x78] sm:$0xff] %v343_v7 }

// kernel: lightgcn_forward.9
= control target key start
LH: loop header
LB: loop body
LE: loop exit
PB: predicated region body
PF: predicated region fallthrough
CT: control target
= control target key end

     0   :  { %s614_s1 = inlined_call_operand.vmem [shape: bf16[128,128], index: 1, kind: input, shape index: {}]   ;;  %s615_s0 = inlined_call_operand.vmem [shape: bf16[128,128], index: 0, kind: input, shape index: {}]   ;;  %s616_s2 = inlined_call_operand.vmem [shape: f32[128,128], index: 2, kind: input, shape index: {}, may-alias: {2,3}]   ;;  %s617_s3 = inlined_call_operand.vmem [shape: f32[128,128], index: 3, kind: output, shape index: {}, may-alias: {2,3}]  }
   0x1   :  { %v425_v0 = vld [vmem:[%s614_s1 + $0x38] sm:$0xff]  ;;  %v424_v1 = vld [vmem:[%s614_s1 + $0x30] sm:$0xff]  ;;  %v423_v2 = vld [vmem:[%s614_s1 + $0x28] sm:$0xff] }
   0x2   :  { %178 = vmatpush.bf16.msra.mxu0 %v425_v0  ;;  %426 = vmatpush.bf16.msra.mxu1 %v425_v0  ;;  %v422_v3 = vld [vmem:[%s614_s1 + $0x20] sm:$0xff]  ;;  %v421_v4 = vld [vmem:[%s614_s1 + $0x18] sm:$0xff]  ;;  %v420_v5 = vld [vmem:[%s614_s1 + $0x10] sm:$0xff] }
   0x3   :  { %427 = vmatpush.bf16.msra.mxu2 %v425_v0  ;;  %428 = vmatpush.bf16.msra.mxu3 %v425_v0  ;;  %v419_v6 = vld [vmem:[%s614_s1 + $0x8] sm:$0xff]  ;;  %v418_v7 = vld [vmem:[%s614_s1] sm:$0xff]  ;;  %v412_v9 = vld [vmem:[%s615_s0 + $0x10] sm:$0xff] }
   0x4   :  { %v410_v8 = vld [vmem:[%s615_s0] sm:$0xff]  ;;  %v416_v11 = vld [vmem:[%s615_s0 + $0x30] sm:$0xff]  ;;  %v411_v12 = vld [vmem:[%s615_s0 + $0x8] sm:$0xff] }
   0x5   :  { %v414_v10 = vld [vmem:[%s615_s0 + $0x20] sm:$0xff]  ;;  %v413_v13 = vld [vmem:[%s615_s0 + $0x18] sm:$0xff]  ;;  %v415_v14 = vld [vmem:[%s615_s0 + $0x28] sm:$0xff] }
   0x6   :  { %179 = vmatpush.bf16.msra.mxu0 %v424_v1  ;;  %429 = vmatpush.bf16.msra.mxu1 %v424_v1  ;;  %v417_v15 = vld [vmem:[%s615_s0 + $0x38] sm:$0xff]  ;;  %v262_v16 = vld [vmem:[%s616_s2] sm:$0xff] }
   0x7   :  { %430 = vmatpush.bf16.msra.mxu2 %v424_v1  ;;  %431 = vmatpush.bf16.msra.mxu3 %v424_v1  ;;  %v266_v17 = vld [vmem:[%s616_s2 + $0x20] sm:$0xff] }
   0xa   :  { %180 = vmatpush.bf16.msra.mxu0 %v423_v2  ;;  %432 = vmatpush.bf16.msra.mxu1 %v423_v2 }
   0xb   :  { %433 = vmatpush.bf16.msra.mxu2 %v423_v2  ;;  %434 = vmatpush.bf16.msra.mxu3 %v423_v2 }
   0xe   :  { %181 = vmatpush.bf16.msra.mxu0 %v422_v3  ;;  %435 = vmatpush.bf16.msra.mxu1 %v422_v3 }
   0xf   :  { %436 = vmatpush.bf16.msra.mxu2 %v422_v3  ;;  %437 = vmatpush.bf16.msra.mxu3 %v422_v3 }
  0x12   :  { %182 = vmatpush.bf16.msra.mxu0 %v421_v4  ;;  %438 = vmatpush.bf16.msra.mxu1 %v421_v4 }
  0x13   :  { %439 = vmatpush.bf16.msra.mxu2 %v421_v4  ;;  %440 = vmatpush.bf16.msra.mxu3 %v421_v4 }
  0x16   :  { %183 = vmatpush.bf16.msra.mxu0 %v420_v5  ;;  %441 = vmatpush.bf16.msra.mxu1 %v420_v5 }
  0x17   :  { %442 = vmatpush.bf16.msra.mxu2 %v420_v5  ;;  %443 = vmatpush.bf16.msra.mxu3 %v420_v5 }
  0x1a   :  { %184 = vmatpush.bf16.msra.mxu0 %v419_v6  ;;  %444 = vmatpush.bf16.msra.mxu1 %v419_v6 }
  0x1b   :  { %445 = vmatpush.bf16.msra.mxu2 %v419_v6  ;;  %446 = vmatpush.bf16.msra.mxu3 %v419_v6 }
  0x1e   :  { %185 = vmatpush.bf16.msra.mxu0 %v418_v7  ;;  %447 = vmatpush.bf16.msra.mxu1 %v418_v7 }
  0x1f   :  { %448 = vmatpush.bf16.msra.mxu2 %v418_v7  ;;  %449 = vmatpush.bf16.msra.mxu3 %v418_v7 }
  0x21   :  { %186 = vmatmul.bf16.vlgmr.msra.gmra.mxu0 %v410_v8  ;;  %196 = vmatmul.bf16.vlgmr.msra.gmra.mxu1 %v412_v9 }
  0x22   :  { %206 = vmatmul.bf16.vlgmr.msra.gmra.mxu2 %v414_v10  ;;  %216 = vmatmul.bf16.vlgmr.msra.gmra.mxu3 %v416_v11 }
  0x31   :  { %191 = vmatmul.bf16.gmra.mxu0 %v411_v12  ;;  %201 = vmatmul.bf16.gmra.mxu1 %v413_v13 }
  0x32   :  { %211 = vmatmul.bf16.gmra.mxu2 %v415_v14  ;;  %221 = vmatmul.bf16.gmra.mxu3 %v417_v15 }
  0x9e   :  { %v187_v18 = vpop.f32.mrf.mxu0  ;;  %v197_v19 = vpop.f32.mrf.mxu1 }
  0x9f   :  { %v294_v20 = vadd.f32 %v262_v16, %v187_v18  ;;  %v298_v21 = vadd.f32 %v266_v17, %v197_v19 }
  0xa1   :  { %v310_v22 = vmul.f32 0.33333334, %v294_v20  ;;  %v314_v23 = vmul.f32 0.33333334, %v298_v21 }
  0xa3   :  { %326 = vst [vmem:[%s617_s3] sm:$0xff] %v310_v22 }
  0xa5   :  { %v207_v28 = vpop.f32.mrf.mxu2  ;;  %v217_v29 = vpop.f32.mrf.mxu3 }
  0xa6   :  { %v189_v32 = vpop.f32.mrf.mxu0  ;;  %v199_v33 = vpop.f32.mrf.mxu1 }
  0xaa   :  { %v270_v24 = vld [vmem:[%s616_s2 + $0x40] sm:$0xff] }
  0xab   :  { %v274_v25 = vld [vmem:[%s616_s2 + $0x60] sm:$0xff]  ;;  %v302_v30 = vadd.f32 %v270_v24, %v207_v28 }
  0xac   :  { %330 = vst [vmem:[%s617_s3 + $0x20] sm:$0xff] %v314_v23  ;;  %v306_v31 = vadd.f32 %v274_v25, %v217_v29 }
  0xad   :  { %v318_v36 = vmul.f32 0.33333334, %v302_v30  ;;  %v209_v44 = vpop.f32.mrf.mxu2  ;;  %v219_v45 = vpop.f32.mrf.mxu3 }
  0xae   :  { %v322_v37 = vmul.f32 0.33333334, %v306_v31  ;;  %v192_v48 = vpop.f32.mrf.mxu0  ;;  %v202_v49 = vpop.f32.mrf.mxu1 }
  0xb3   :  { %v263_v26 = vld [vmem:[%s616_s2 + $0x8] sm:$0xff] }
  0xb4   :  { %v267_v27 = vld [vmem:[%s616_s2 + $0x28] sm:$0xff]  ;;  %v295_v34 = vadd.f32 %v263_v26, %v189_v32 }
  0xb5   :  { %v299_v35 = vadd.f32 %v267_v27, %v199_v33  ;;  %334 = vst [vmem:[%s617_s3 + $0x40] sm:$0xff] %v318_v36  ;;  %v212_v60 = vpop.f32.mrf.mxu2  ;;  %v222_v61 = vpop.f32.mrf.mxu3 }
  0xb6   :  { %v311_v38 = vmul.f32 0.33333334, %v295_v34  ;;  %338 = vst [vmem:[%s617_s3 + $0x60] sm:$0xff] %v322_v37  ;;  %v194_v0 = vpop.f32.mrf.mxu0  ;;  %v204_v1 = vpop.f32.mrf.mxu1 }
  0xb7   :  { %v315_v39 = vmul.f32 0.33333334, %v299_v35 }
  0xbd   :  { %v271_v40 = vld [vmem:[%s616_s2 + $0x48] sm:$0xff]  ;;  %v214_v10 = vpop.f32.mrf.mxu2  ;;  %v224_v11 = vpop.f32.mrf.mxu3 }
  0xbe   :  { %v275_v41 = vld [vmem:[%s616_s2 + $0x68] sm:$0xff]  ;;  %v303_v46 = vadd.f32 %v271_v40, %v209_v44 }
  0xbf   :  { %327 = vst [vmem:[%s617_s3 + $0x8] sm:$0xff] %v311_v38  ;;  %v307_v47 = vadd.f32 %v275_v41, %v219_v45 }
  0xc0   :  { %v319_v52 = vmul.f32 0.33333334, %v303_v46 }
  0xc1   :  { %v323_v53 = vmul.f32 0.33333334, %v307_v47 }
  0xc6   :  { %v264_v42 = vld [vmem:[%s616_s2 + $0x10] sm:$0xff] }
  0xc7   :  { %v268_v43 = vld [vmem:[%s616_s2 + $0x30] sm:$0xff]  ;;  %v296_v50 = vadd.f32 %v264_v42, %v192_v48 }
  0xc8   :  { %331 = vst [vmem:[%s617_s3 + $0x28] sm:$0xff] %v315_v39  ;;  %v300_v51 = vadd.f32 %v268_v43, %v202_v49 }
  0xc9   :  { %v312_v54 = vmul.f32 0.33333334, %v296_v50  ;;  %335 = vst [vmem:[%s617_s3 + $0x48] sm:$0xff] %v319_v52 }
  0xca   :  { %v316_v55 = vmul.f32 0.33333334, %v300_v51  ;;  %339 = vst [vmem:[%s617_s3 + $0x68] sm:$0xff] %v323_v53 }
  0xd1   :  { %v272_v56 = vld [vmem:[%s616_s2 + $0x50] sm:$0xff] }
  0xd2   :  { %v276_v57 = vld [vmem:[%s616_s2 + $0x70] sm:$0xff]  ;;  %v304_v62 = vadd.f32 %v272_v56, %v212_v60 }
  0xd3   :  { %328 = vst [vmem:[%s617_s3 + $0x10] sm:$0xff] %v312_v54  ;;  %v308_v63 = vadd.f32 %v276_v57, %v222_v61 }
  0xd4   :  { %v320_v4 = vmul.f32 0.33333334, %v304_v62 }
  0xd5   :  { %v324_v5 = vmul.f32 0.33333334, %v308_v63 }
  0xda   :  { %v265_v58 = vld [vmem:[%s616_s2 + $0x18] sm:$0xff] }
  0xdb   :  { %v269_v59 = vld [vmem:[%s616_s2 + $0x38] sm:$0xff]  ;;  %v297_v2 = vadd.f32 %v265_v58, %v194_v0 }
  0xdc   :  { %332 = vst [vmem:[%s617_s3 + $0x30] sm:$0xff] %v316_v55  ;;  %v301_v3 = vadd.f32 %v269_v59, %v204_v1 }
  0xdd   :  { %v313_v6 = vmul.f32 0.33333334, %v297_v2  ;;  %336 = vst [vmem:[%s617_s3 + $0x50] sm:$0xff] %v320_v4 }
  0xde   :  { %v317_v7 = vmul.f32 0.33333334, %v301_v3  ;;  %340 = vst [vmem:[%s617_s3 + $0x70] sm:$0xff] %v324_v5 }
  0xe5   :  { %v273_v8 = vld [vmem:[%s616_s2 + $0x58] sm:$0xff] }
  0xe6   :  { %v277_v9 = vld [vmem:[%s616_s2 + $0x78] sm:$0xff]  ;;  %v305_v12 = vadd.f32 %v273_v8, %v214_v10 }
  0xe7   :  { %329 = vst [vmem:[%s617_s3 + $0x18] sm:$0xff] %v313_v6  ;;  %v309_v13 = vadd.f32 %v277_v9, %v224_v11 }
  0xe8   :  { %333 = vst [vmem:[%s617_s3 + $0x38] sm:$0xff] %v317_v7  ;;  %v321_v14 = vmul.f32 0.33333334, %v305_v12 }
  0xe9   :  { %v325_v15 = vmul.f32 0.33333334, %v309_v13 }
  0xea   :  { %337 = vst [vmem:[%s617_s3 + $0x58] sm:$0xff] %v321_v14 }
  0xeb   :  { %341 = vst [vmem:[%s617_s3 + $0x78] sm:$0xff] %v325_v15 }

// kernel: lightgcn_forward.13
= control target key start
LH: loop header
LB: loop body
LE: loop exit
PB: predicated region body
PF: predicated region fallthrough
CT: control target
= control target key end

     0   :  { %s1039_s1 = inlined_call_operand.vmem [shape: bf16[128,128], index: 1, kind: input, shape index: {}]   ;;  %s1040_s0 = inlined_call_operand.vmem [shape: bf16[128,128], index: 0, kind: input, shape index: {}]   ;;  %s1041_s2 = inlined_call_operand.vmem [shape: f32[128,128], index: 2, kind: input, shape index: {}, may-alias: {2,3}]   ;;  %s1042_s3 = inlined_call_operand.vmem [shape: f32[128,128], index: 3, kind: output, shape index: {}, may-alias: {2,3}]  }
   0x1   :  { %v665_v0 = vld [vmem:[%s1039_s1 + $0x38] sm:$0xff]  ;;  %v664_v1 = vld [vmem:[%s1039_s1 + $0x30] sm:$0xff]  ;;  %v663_v2 = vld [vmem:[%s1039_s1 + $0x28] sm:$0xff] }
   0x2   :  { %178 = vmatpush.bf16.msra.mxu0 %v665_v0  ;;  %666 = vmatpush.bf16.msra.mxu1 %v665_v0  ;;  %v662_v3 = vld [vmem:[%s1039_s1 + $0x20] sm:$0xff]  ;;  %v661_v4 = vld [vmem:[%s1039_s1 + $0x18] sm:$0xff]  ;;  %v660_v5 = vld [vmem:[%s1039_s1 + $0x10] sm:$0xff] }
   0x3   :  { %667 = vmatpush.bf16.msra.mxu2 %v665_v0  ;;  %668 = vmatpush.bf16.msra.mxu3 %v665_v0  ;;  %v659_v6 = vld [vmem:[%s1039_s1 + $0x8] sm:$0xff]  ;;  %v658_v7 = vld [vmem:[%s1039_s1] sm:$0xff]  ;;  %v652_v9 = vld [vmem:[%s1040_s0 + $0x10] sm:$0xff] }
   0x4   :  { %v650_v8 = vld [vmem:[%s1040_s0] sm:$0xff]  ;;  %v656_v11 = vld [vmem:[%s1040_s0 + $0x30] sm:$0xff]  ;;  %v651_v12 = vld [vmem:[%s1040_s0 + $0x8] sm:$0xff] }
   0x5   :  { %v654_v10 = vld [vmem:[%s1040_s0 + $0x20] sm:$0xff]  ;;  %v653_v13 = vld [vmem:[%s1040_s0 + $0x18] sm:$0xff]  ;;  %v655_v14 = vld [vmem:[%s1040_s0 + $0x28] sm:$0xff] }
   0x6   :  { %179 = vmatpush.bf16.msra.mxu0 %v664_v1  ;;  %669 = vmatpush.bf16.msra.mxu1 %v664_v1  ;;  %v657_v15 = vld [vmem:[%s1040_s0 + $0x38] sm:$0xff]  ;;  %v262_v16 = vld [vmem:[%s1041_s2] sm:$0xff]  ;;  %v267_v34 = vld [vmem:[%s1041_s2 + $0x28] sm:$0xff] }
   0x7   :  { %670 = vmatpush.bf16.msra.mxu2 %v664_v1  ;;  %671 = vmatpush.bf16.msra.mxu3 %v664_v1  ;;  %v266_v17 = vld [vmem:[%s1041_s2 + $0x20] sm:$0xff]  ;;  %v263_v36 = vld [vmem:[%s1041_s2 + $0x8] sm:$0xff]  ;;  %v264_v42 = vld [vmem:[%s1041_s2 + $0x10] sm:$0xff] }
   0x8   :  { %v270_v24 = vld [vmem:[%s1041_s2 + $0x40] sm:$0xff]  ;;  %v271_v49 = vld [vmem:[%s1041_s2 + $0x48] sm:$0xff]  ;;  %v272_v53 = vld [vmem:[%s1041_s2 + $0x50] sm:$0xff] }
   0x9   :  { %v274_v27 = vld [vmem:[%s1041_s2 + $0x60] sm:$0xff]  ;;  %v268_v59 = vld [vmem:[%s1041_s2 + $0x30] sm:$0xff]  ;;  %v265_v0 = vld [vmem:[%s1041_s2 + $0x18] sm:$0xff] }
   0xa   :  { %180 = vmatpush.bf16.msra.mxu0 %v663_v2  ;;  %672 = vmatpush.bf16.msra.mxu1 %v663_v2 }
   0xb   :  { %673 = vmatpush.bf16.msra.mxu2 %v663_v2  ;;  %674 = vmatpush.bf16.msra.mxu3 %v663_v2 }
   0xe   :  { %181 = vmatpush.bf16.msra.mxu0 %v662_v3  ;;  %675 = vmatpush.bf16.msra.mxu1 %v662_v3 }
   0xf   :  { %676 = vmatpush.bf16.msra.mxu2 %v662_v3  ;;  %677 = vmatpush.bf16.msra.mxu3 %v662_v3  ;;  %v273_v3 = vld [vmem:[%s1041_s2 + $0x58] sm:$0xff] }
  0x12   :  { %182 = vmatpush.bf16.msra.mxu0 %v661_v4  ;;  %678 = vmatpush.bf16.msra.mxu1 %v661_v4 }
  0x13   :  { %679 = vmatpush.bf16.msra.mxu2 %v661_v4  ;;  %680 = vmatpush.bf16.msra.mxu3 %v661_v4 }
  0x16   :  { %183 = vmatpush.bf16.msra.mxu0 %v660_v5  ;;  %681 = vmatpush.bf16.msra.mxu1 %v660_v5 }
  0x17   :  { %682 = vmatpush.bf16.msra.mxu2 %v660_v5  ;;  %683 = vmatpush.bf16.msra.mxu3 %v660_v5 }
  0x1a   :  { %184 = vmatpush.bf16.msra.mxu0 %v659_v6  ;;  %684 = vmatpush.bf16.msra.mxu1 %v659_v6 }
  0x1b   :  { %685 = vmatpush.bf16.msra.mxu2 %v659_v6  ;;  %686 = vmatpush.bf16.msra.mxu3 %v659_v6 }
  0x1e   :  { %185 = vmatpush.bf16.msra.mxu0 %v658_v7  ;;  %687 = vmatpush.bf16.msra.mxu1 %v658_v7 }
  0x1f   :  { %688 = vmatpush.bf16.msra.mxu2 %v658_v7  ;;  %689 = vmatpush.bf16.msra.mxu3 %v658_v7 }
  0x21   :  { %186 = vmatmul.bf16.vlgmr.msra.gmra.mxu0 %v650_v8  ;;  %196 = vmatmul.bf16.vlgmr.msra.gmra.mxu1 %v652_v9  ;;  %v276_v8 = vld [vmem:[%s1041_s2 + $0x70] sm:$0xff] }
  0x22   :  { %206 = vmatmul.bf16.vlgmr.msra.gmra.mxu2 %v654_v10  ;;  %216 = vmatmul.bf16.vlgmr.msra.gmra.mxu3 %v656_v11  ;;  %v277_v11 = vld [vmem:[%s1041_s2 + $0x78] sm:$0xff] }
  0x31   :  { %191 = vmatmul.bf16.gmra.mxu0 %v651_v12  ;;  %201 = vmatmul.bf16.gmra.mxu1 %v653_v13 }
  0x32   :  { %211 = vmatmul.bf16.gmra.mxu2 %v655_v14  ;;  %221 = vmatmul.bf16.gmra.mxu3 %v657_v15 }
  0x9e   :  { %v187_v18 = vpop.f32.mrf.mxu0  ;;  %v197_v19 = vpop.f32.mrf.mxu1 }
  0x9f   :  { %v294_v20 = vadd.f32 %v262_v16, %v187_v18  ;;  %v298_v21 = vadd.f32 %v266_v17, %v197_v19  ;;  %v269_v16 = vld [vmem:[%s1041_s2 + $0x38] sm:$0xff] }
  0xa1   :  { %v796_v22 = vmul.f32 0.33333334, %v294_v20  ;;  %v798_v23 = vmul.f32 0.33333334, %v298_v21 }
  0xa3   :  { %v330_v25 = vmul.f32 %v798_v23, %v798_v23  ;;  %v326_v26 = vmul.f32 %v796_v22, %v796_v22 }
  0xa5   :  { %v207_v28 = vpop.f32.mrf.mxu2  ;;  %350 = vadd.xlane.f32.xlu2 %v330_v25  ;;  %342 = vadd.xlane.f32.xlu0 %v326_v26  ;;  %v217_v29 = vpop.f32.mrf.mxu3 }
  0xa6   :  { %v302_v30 = vadd.f32 %v270_v24, %v207_v28  ;;  %v189_v31 = vpop.f32.mrf.mxu0  ;;  %v306_v32 = vadd.f32 %v274_v27, %v217_v29  ;;  %v199_v33 = vpop.f32.mrf.mxu1  ;;  %v275_v28 = vld [vmem:[%s1041_s2 + $0x68] sm:$0xff] }
  0xa7   :  { %v299_v38 = vadd.f32 %v267_v34, %v199_v33  ;;  %v295_v41 = vadd.f32 %v263_v36, %v189_v31 }
  0xa8   :  { %v813_v35 = vmul.f32 0.33333334, %v302_v30  ;;  %v818_v37 = vmul.f32 0.33333334, %v306_v32 }
  0xa9   :  { %v827_v44 = vmul.f32 0.33333334, %v299_v38  ;;  %v829_v47 = vmul.f32 0.33333334, %v295_v41 }
  0xaa   :  { %v334_v39 = vmul.f32 %v813_v35, %v813_v35  ;;  %v338_v40 = vmul.f32 %v818_v37, %v818_v37 }
  0xab   :  { %v331_v51 = vmul.f32 %v827_v44, %v827_v44  ;;  %v327_v54 = vmul.f32 %v829_v47, %v829_v47 }
  0xad   :  { %v209_v43 = vpop.f32.mrf.mxu2  ;;  %358 = vadd.xlane.f32.xlu2 %v334_v39  ;;  %366 = vadd.xlane.f32.xlu0 %v338_v40  ;;  %v219_v45 = vpop.f32.mrf.mxu3 }
  0xae   :  { %v192_v46 = vpop.f32.mrf.mxu0  ;;  %v303_v52 = vadd.f32 %v271_v49, %v209_v43  ;;  %v202_v61 = vpop.f32.mrf.mxu1  ;;  %v307_v30 = vadd.f32 %v275_v28, %v219_v45 }
  0xaf   :  { %v296_v48 = vadd.f32 %v264_v42, %v192_v46  ;;  %v300_v1 = vadd.f32 %v268_v59, %v202_v61 }
  0xb0   :  { %v848_v60 = vmul.f32 0.33333334, %v303_v52  ;;  %v898_v32 = vmul.f32 0.33333334, %v307_v30 }
  0xb1   :  { %v834_v50 = vmul.f32 0.33333334, %v296_v48  ;;  %v862_v6 = vmul.f32 0.33333334, %v300_v1 }
  0xb2   :  { %v335_v4 = vmul.f32 %v848_v60, %v848_v60  ;;  %v339_v33 = vmul.f32 %v898_v32, %v898_v32 }
  0xb3   :  { %v328_v55 = vmul.f32 %v834_v50, %v834_v50  ;;  %v332_v17 = vmul.f32 %v862_v6, %v862_v6 }
  0xb5   :  { %v212_v56 = vpop.f32.mrf.mxu2  ;;  %352 = vadd.xlane.f32.xlu2 %v331_v51  ;;  %344 = vadd.xlane.f32.xlu0 %v327_v54  ;;  %v222_v57 = vpop.f32.mrf.mxu3 }
  0xb6   :  { %v304_v58 = vadd.f32 %v272_v53, %v212_v56  ;;  %346 = vadd.xlane.f32.xlu1 %v328_v55  ;;  %v194_v63 = vpop.f32.mrf.mxu0  ;;  %v308_v14 = vadd.f32 %v276_v8, %v222_v57  ;;  %v204_v15 = vpop.f32.mrf.mxu1 }
  0xb7   :  { %v297_v5 = vadd.f32 %v265_v0, %v194_v63  ;;  %v301_v20 = vadd.f32 %v269_v16, %v204_v15 }
  0xb8   :  { %v850_v62 = vmul.f32 0.33333334, %v304_v58  ;;  %v881_v21 = vmul.f32 0.33333334, %v308_v14 }
  0xb9   :  { %v870_v12 = vmul.f32 0.33333334, %v297_v5  ;;  %v887_v26 = vmul.f32 0.33333334, %v301_v20 }
  0xba   :  { %v336_v2 = vmul.f32 %v850_v62, %v850_v62  ;;  %v340_v27 = vmul.f32 %v881_v21, %v881_v21 }
  0xbb   :  { %v329_v24 = vmul.f32 %v870_v12, %v870_v12  ;;  %v333_v31 = vmul.f32 %v887_v26, %v887_v26 }
  0xbd   :  { %v214_v7 = vpop.f32.mrf.mxu2  ;;  %360 = vadd.xlane.f32.xlu0 %v335_v4  ;;  %v224_v10 = vpop.f32.mrf.mxu3 }
  0xbe   :  { %v305_v9 = vadd.f32 %v273_v3, %v214_v7  ;;  %362 = vadd.xlane.f32.xlu1 %v336_v2  ;;  %v309_v18 = vadd.f32 %v277_v11, %v224_v10 }
  0xc0   :  { %v872_v13 = vmul.f32 0.33333334, %v305_v9  ;;  %v885_v25 = vmul.f32 0.33333334, %v309_v18 }
  0xc2   :  { %v337_v19 = vmul.f32 %v872_v13, %v872_v13  ;;  %v341_v29 = vmul.f32 %v885_v25, %v885_v25 }
  0xc4   :  { %364 = vadd.xlane.f32.xlu2 %v337_v19 }
  0xc5   :  { %354 = vadd.xlane.f32.xlu0 %v332_v17 }
  0xc6   :  { %348 = vadd.xlane.f32.xlu1 %v329_v24 }
  0xcc   :  { %370 = vadd.xlane.f32.xlu2 %v340_v27 }
  0xcd   :  { %372 = vadd.xlane.f32.xlu0 %v341_v29 }
  0xce   :  { %356 = vadd.xlane.f32.xlu1 %v333_v31 }
  0xd6   :  { %368 = vadd.xlane.f32.xlu1 %v339_v33 }
 0x118   :  { %v351_v34 = vpop.xlane.xlu2 %350  ;;  %v343_v36 = vpop.xlane.xlu0 %342 }
 0x119   :  { %v378_v38 = vmax.f32 %v351_v34, 1e-24  ;;  %v374_v39 = vmax.f32 %v343_v36, 1e-24 }
 0x11b   :  { %690 = vrsqrt.f32 %v378_v38  ;;  %vm436_vm0 = vweird.f32 %v378_v38  ;;  %vm396_vm4 = vweird.f32 %v374_v39 }
 0x11c   :  { %692 = vrsqrt.f32 %v374_v39 }
 0x120   :  { %v359_v40 = vpop.xlane.xlu2 %358  ;;  %v367_v41 = vpop.xlane.xlu0 %366 }
 0x121   :  { %v691_v42 = vpop.eup %690  ;;  %v382_v43 = vmax.f32 %v359_v40, 1e-24  ;;  %v902_v45 = vmax.f32 %v367_v41, 1e-24 }
 0x122   :  { %v693_v46 = vpop.eup %692  ;;  %v431_v48 = vmul.f32 %v691_v42, %v378_v38  ;;  %vm437_vm1 = vweird.f32 %v691_v42 }
 0x123   :  { %v391_v49 = vmul.f32 %v693_v46, %v374_v39  ;;  %694 = vrsqrt.f32 %v382_v43  ;;  %vm905_vm2 = vmor %vm436_vm0, %vm437_vm1  ;;  %vm397_vm3 = vweird.f32 %v693_v46  ;;  %vm516_vm7 = vweird.f32 %v902_v45 }
 0x124   :  { %v432_v51 = vmul.f32 %v691_v42, %v431_v48  ;;  %696 = vrsqrt.f32 %v902_v45  ;;  %vm398_vm5 = vmor %vm396_vm4, %vm397_vm3  ;;  %vm476_vm9 = vweird.f32 %v382_v43 }
 0x125   :  { %v392_v52 = vmul.f32 %v693_v46, %v391_v49 }
 0x126   :  { %v433_v53 = vmul.f32 0.5, %v432_v51 }
 0x127   :  { %v393_v54 = vmul.f32 0.5, %v392_v52 }
 0x128   :  { %v434_v55 = vsub.f32 1.5, %v433_v53  ;;  %v353_v56 = vpop.xlane.xlu2 %352  ;;  %v345_v57 = vpop.xlane.xlu0 %344 }
 0x129   :  { %v695_v58 = vpop.eup %694  ;;  %v394_v61 = vsub.f32 1.5, %v393_v54  ;;  %v909_v63 = vmax.f32 %v353_v56, 1e-24  ;;  %v911_v0 = vmax.f32 %v345_v57, 1e-24  ;;  %v347_v1 = vpop.xlane.xlu1 %346 }
 0x12a   :  { %v697_v2 = vpop.eup %696  ;;  %v435_v3 = vmul.f32 %v691_v42, %v434_v55  ;;  %v471_v4 = vmul.f32 %v695_v58, %v382_v43  ;;  %v913_v5 = vmax.f32 %v347_v1, 1e-24  ;;  %vm477_vm6 = vweird.f32 %v695_v58 }
 0x12b   :  { %v395_v7 = vmul.f32 %v693_v46, %v394_v61  ;;  %v511_v8 = vmul.f32 %v697_v2, %v902_v45  ;;  %698 = vrsqrt.f32 %v909_v63  ;;  %vm517_vm8 = vweird.f32 %v697_v2  ;;  %vm478_vm10 = vmor %vm476_vm9, %vm477_vm6 }
 0x12c   :  { %v439_v9 = vsel %vm905_vm2, %v691_v42, %v435_v3  ;;  %v472_v10 = vmul.f32 %v695_v58, %v471_v4  ;;  %700 = vrsqrt.f32 %v911_v0  ;;  %vm518_vm11 = vmor %vm516_vm7, %vm517_vm8  ;;  %vm446_vm12 = vweird.f32 %v909_v63 }
 0x12d   :  { %v554_v11 = vmul.f32 %v439_v9, %v798_v23  ;;  %v399_v14 = vsel %vm398_vm5, %v693_v46, %v395_v7  ;;  %v512_v15 = vmul.f32 %v697_v2, %v511_v8  ;;  %702 = vrsqrt.f32 %v913_v5 }
 0x12e   :  { %v550_v16 = vmul.f32 %v399_v14, %v796_v22  ;;  %v473_v17 = vmul.f32 0.5, %v472_v10  ;;  %vm406_vm15 = vweird.f32 %v911_v0  ;;  %vm416_vm3 = vweird.f32 %v913_v5 }
 0x12f   :  { %570 = vst [vmem:[%s1042_s3 + $0x20] sm:$0xff] %v554_v11  ;;  %v513_v18 = vmul.f32 0.5, %v512_v15 }
 0x130   :  { %566 = vst [vmem:[%s1042_s3] sm:$0xff] %v550_v16  ;;  %v474_v19 = vsub.f32 1.5, %v473_v17  ;;  %v361_v20 = vpop.xlane.xlu0 %360 }
 0x131   :  { %v699_v23 = vpop.eup %698  ;;  %v514_v24 = vsub.f32 1.5, %v513_v18  ;;  %v930_v22 = vmax.f32 %v361_v20, 1e-24  ;;  %v363_v27 = vpop.xlane.xlu1 %362 }
 0x132   :  { %v701_v28 = vpop.eup %700  ;;  %v475_v29 = vmul.f32 %v695_v58, %v474_v19  ;;  %v441_v30 = vmul.f32 %v699_v23, %v909_v63  ;;  %v933_v31 = vmax.f32 %v363_v27, 1e-24  ;;  %vm447_vm13 = vweird.f32 %v699_v23 }
 0x133   :  { %v515_v33 = vmul.f32 %v697_v2, %v514_v24  ;;  %v401_v34 = vmul.f32 %v701_v28, %v911_v0  ;;  %704 = vrsqrt.f32 %v930_v22  ;;  %v703_v36 = vpop.eup %702  ;;  %vm407_vm14 = vweird.f32 %v701_v28  ;;  %vm448_vm0 = vmor %vm446_vm12, %vm447_vm13 }
 0x134   :  { %v479_v38 = vsel %vm478_vm10, %v695_v58, %v475_v29  ;;  %v442_v39 = vmul.f32 %v699_v23, %v441_v30  ;;  %706 = vrsqrt.f32 %v933_v31  ;;  %v411_v43 = vmul.f32 %v703_v36, %v913_v5  ;;  %vm408_vm2 = vmor %vm406_vm15, %vm407_vm14 }
 0x135   :  { %v558_v40 = vmul.f32 %v479_v38, %v813_v35  ;;  %v519_v41 = vsel %vm518_vm11, %v697_v2, %v515_v33  ;;  %v402_v42 = vmul.f32 %v701_v28, %v401_v34  ;;  %vm417_vm1 = vweird.f32 %v703_v36 }
 0x136   :  { %v562_v46 = vmul.f32 %v519_v41, %v818_v37  ;;  %v443_v48 = vmul.f32 0.5, %v442_v39  ;;  %v412_v51 = vmul.f32 %v703_v36, %v411_v43  ;;  %vm418_vm4 = vmor %vm416_vm3, %vm417_vm1  ;;  %vm486_vm7 = vweird.f32 %v930_v22 }
 0x137   :  { %574 = vst [vmem:[%s1042_s3 + $0x40] sm:$0xff] %v558_v40  ;;  %v403_v49 = vmul.f32 0.5, %v402_v42  ;;  %v365_v45 = vpop.xlane.xlu2 %364  ;;  %vm496_vm9 = vweird.f32 %v933_v31 }
 0x138   :  { %578 = vst [vmem:[%s1042_s3 + $0x60] sm:$0xff] %v562_v46  ;;  %v444_v52 = vsub.f32 1.5, %v443_v48  ;;  %v950_v35 = vmax.f32 %v365_v45, 1e-24  ;;  %v355_v53 = vpop.xlane.xlu0 %354  ;;  %v413_v55 = vmul.f32 0.5, %v412_v51 }
 0x139   :  { %v705_v37 = vpop.eup %704  ;;  %v404_v54 = vsub.f32 1.5, %v403_v49  ;;  %v952_v56 = vmax.f32 %v355_v53, 1e-24  ;;  %v349_v57 = vpop.xlane.xlu1 %348 }
 0x13a   :  { %v707_v58 = vpop.eup %706  ;;  %v445_v59 = vmul.f32 %v699_v23, %v444_v52  ;;  %v481_v61 = vmul.f32 %v705_v37, %v930_v22  ;;  %708 = vrsqrt.f32 %v950_v35  ;;  %v414_v2 = vsub.f32 1.5, %v413_v55 }
 0x13b   :  { %v405_v1 = vmul.f32 %v701_v28, %v404_v54  ;;  %v491_v3 = vmul.f32 %v707_v58, %v933_v31  ;;  %710 = vrsqrt.f32 %v952_v56  ;;  %v965_v14 = vmax.f32 %v349_v57, 1e-24 }
 0x13c   :  { %v449_v4 = vsel %vm448_vm0, %v699_v23, %v445_v59  ;;  %v482_v7 = vmul.f32 %v705_v37, %v481_v61  ;;  %v415_v9 = vmul.f32 %v703_v36, %v414_v2  ;;  %vm487_vm5 = vweird.f32 %v705_v37 }
 0x13d   :  { %v555_v0 = vmul.f32 %v449_v4, %v827_v44  ;;  %v409_v8 = vsel %vm408_vm2, %v701_v28, %v405_v1  ;;  %v492_v10 = vmul.f32 %v707_v58, %v491_v3  ;;  %712 = vrsqrt.f32 %v965_v14  ;;  %vm488_vm8 = vmor %vm486_vm7, %vm487_vm5 }
 0x13e   :  { %v551_v63 = vmul.f32 %v409_v8, %v829_v47  ;;  %v483_v11 = vmul.f32 0.5, %v482_v7  ;;  %v419_v15 = vsel %vm418_vm4, %v703_v36, %v415_v9  ;;  %vm497_vm6 = vweird.f32 %v707_v58 }
 0x13f   :  { %571 = vst [vmem:[%s1042_s3 + $0x28] sm:$0xff] %v555_v0  ;;  %v493_v5 = vmul.f32 0.5, %v492_v10  ;;  %v371_v16 = vpop.xlane.xlu2 %370  ;;  %v552_v44 = vmul.f32 %v419_v15, %v834_v50  ;;  %vm498_vm10 = vmor %vm496_vm9, %vm497_vm6  ;;  %vm506_vm12 = vweird.f32 %v950_v35  ;;  %vm456_vm15 = vweird.f32 %v952_v56 }
 0x140   :  { %v709_v17 = vpop.eup %708  ;;  %567 = vst [vmem:[%s1042_s3 + $0x8] sm:$0xff] %v551_v63  ;;  %v484_v18 = vsub.f32 1.5, %v483_v11  ;;  %v373_v47 = vpop.xlane.xlu0 %372  ;;  %v976_v23 = vmax.f32 %v371_v16, 1e-24  ;;  %vm426_vm2 = vweird.f32 %v965_v14 }
 0x141   :  { %v494_v19 = vsub.f32 1.5, %v493_v5  ;;  %v501_v20 = vmul.f32 %v709_v17, %v950_v35  ;;  %v357_v24 = vpop.xlane.xlu1 %356  ;;  %v711_v27 = vpop.eup %710  ;;  %568 = vst [vmem:[%s1042_s3 + $0x10] sm:$0xff] %v552_v44  ;;  %v982_v50 = vmax.f32 %v373_v47, 1e-24  ;;  %vm507_vm11 = vweird.f32 %v709_v17 }
 0x142   :  { %v485_v28 = vmul.f32 %v705_v37, %v484_v18  ;;  %v451_v33 = vmul.f32 %v711_v27, %v952_v56  ;;  %714 = vrsqrt.f32 %v976_v23  ;;  %v988_v36 = vmax.f32 %v357_v24, 1e-24  ;;  %vm508_vm14 = vmor %vm506_vm12, %vm507_vm11 }
 0x143   :  { %v495_v29 = vmul.f32 %v707_v58, %v494_v19  ;;  %v502_v30 = vmul.f32 %v709_v17, %v501_v20  ;;  %v713_v41 = vpop.eup %712  ;;  %716 = vrsqrt.f32 %v982_v50  ;;  %vm457_vm13 = vweird.f32 %v711_v27 }
 0x144   :  { %v489_v34 = vsel %vm488_vm8, %v705_v37, %v485_v28  ;;  %v452_v40 = vmul.f32 %v711_v27, %v451_v33  ;;  %v421_v46 = vmul.f32 %v713_v41, %v965_v14  ;;  %718 = vrsqrt.f32 %v988_v36  ;;  %vm458_vm0 = vmor %vm456_vm15, %vm457_vm13 }
 0x145   :  { %v559_v38 = vmul.f32 %v489_v34, %v848_v60  ;;  %v499_v39 = vsel %vm498_vm10, %v707_v58, %v495_v29  ;;  %v503_v22 = vmul.f32 0.5, %v502_v30  ;;  %vm427_vm1 = vweird.f32 %v713_v41 }
 0x146   :  { %v560_v42 = vmul.f32 %v499_v39, %v850_v62  ;;  %v453_v43 = vmul.f32 0.5, %v452_v40  ;;  %v422_v48 = vmul.f32 %v713_v41, %v421_v46  ;;  %vm428_vm3 = vmor %vm426_vm2, %vm427_vm1  ;;  %vm536_vm5 = vweird.f32 %v976_v23 }
 0x147   :  { %575 = vst [vmem:[%s1042_s3 + $0x48] sm:$0xff] %v559_v38  ;;  %v504_v31 = vsub.f32 1.5, %v503_v22  ;;  %vm546_vm8 = vweird.f32 %v982_v50  ;;  %vm466_vm11 = vweird.f32 %v988_v36 }
 0x148   :  { %576 = vst [vmem:[%s1042_s3 + $0x50] sm:$0xff] %v560_v42  ;;  %v454_v62 = vsub.f32 1.5, %v453_v43  ;;  %v715_v51 = vpop.eup %714  ;;  %v423_v37 = vmul.f32 0.5, %v422_v48 }
 0x149   :  { %v505_v60 = vmul.f32 %v709_v17, %v504_v31  ;;  %v369_v49 = vpop.xlane.xlu1 %368  ;;  %v531_v54 = vmul.f32 %v715_v51, %v976_v23  ;;  %v717_v55 = vpop.eup %716  ;;  %vm537_vm4 = vweird.f32 %v715_v51 }
 0x14a   :  { %v387_v45 = vmax.f32 %v369_v49, 1e-24  ;;  %v455_v53 = vmul.f32 %v711_v27, %v454_v62  ;;  %v424_v58 = vsub.f32 1.5, %v423_v37  ;;  %v541_v61 = vmul.f32 %v717_v55, %v982_v50  ;;  %v719_v1 = vpop.eup %718  ;;  %vm538_vm7 = vmor %vm536_vm5, %vm537_vm4 }
 0x14b   :  { %v509_v52 = vsel %vm508_vm14, %v709_v17, %v505_v60  ;;  %v532_v59 = vmul.f32 %v715_v51, %v531_v54  ;;  %v461_v4 = vmul.f32 %v719_v1, %v988_v36  ;;  %vm547_vm6 = vweird.f32 %v717_v55 }
 0x14c   :  { %v561_v35 = vmul.f32 %v509_v52, %v872_v13  ;;  %720 = vrsqrt.f32 %v387_v45  ;;  %v459_v57 = vsel %vm458_vm0, %v711_v27, %v455_v53  ;;  %v425_v2 = vmul.f32 %v713_v41, %v424_v58  ;;  %vm548_vm10 = vmor %vm546_vm8, %vm547_vm6 }
 0x14d   :  { %v556_v56 = vmul.f32 %v459_v57, %v862_v6  ;;  %v533_v3 = vmul.f32 0.5, %v532_v59  ;;  %v542_v13 = vmul.f32 %v717_v55, %v541_v61  ;;  %v462_v9 = vmul.f32 %v719_v1, %v461_v4 }
 0x14e   :  { %577 = vst [vmem:[%s1042_s3 + $0x58] sm:$0xff] %v561_v35  ;;  %v429_v7 = vsel %vm428_vm3, %v713_v41, %v425_v2  ;;  %vm467_vm9 = vweird.f32 %v719_v1  ;;  %vm526_vm14 = vweird.f32 %v387_v45 }
 0x14f   :  { %572 = vst [vmem:[%s1042_s3 + $0x30] sm:$0xff] %v556_v56  ;;  %v534_v0 = vsub.f32 1.5, %v533_v3  ;;  %v543_v8 = vmul.f32 0.5, %v542_v13  ;;  %v553_v6 = vmul.f32 %v429_v7, %v870_v12  ;;  %v463_v14 = vmul.f32 0.5, %v462_v9  ;;  %vm468_vm12 = vmor %vm466_vm11, %vm467_vm9 }
 0x151   :  { %v535_v63 = vmul.f32 %v715_v51, %v534_v0  ;;  %v544_v11 = vsub.f32 1.5, %v543_v8  ;;  %569 = vst [vmem:[%s1042_s3 + $0x18] sm:$0xff] %v553_v6  ;;  %v464_v17 = vsub.f32 1.5, %v463_v14 }
 0x152   :  { %v721_v10 = vpop.eup %720 }
 0x153   :  { %v521_v15 = vmul.f32 %v721_v10, %v387_v45  ;;  %v539_v5 = vsel %vm538_vm7, %v715_v51, %v535_v63  ;;  %v545_v16 = vmul.f32 %v717_v55, %v544_v11  ;;  %v465_v47 = vmul.f32 %v719_v1, %v464_v17 }
 0x154   :  { %v564_v12 = vmul.f32 %v539_v5, %v881_v21  ;;  %vm527_vm13 = vweird.f32 %v721_v10 }
 0x155   :  { %v522_v44 = vmul.f32 %v721_v10, %v521_v15  ;;  %v549_v18 = vsel %vm548_vm10, %v717_v55, %v545_v16  ;;  %v469_v23 = vsel %vm468_vm12, %v719_v1, %v465_v47  ;;  %vm528_vm15 = vmor %vm526_vm14, %vm527_vm13 }
 0x156   :  { %580 = vst [vmem:[%s1042_s3 + $0x70] sm:$0xff] %v564_v12  ;;  %v565_v20 = vmul.f32 %v549_v18, %v885_v25  ;;  %v557_v21 = vmul.f32 %v469_v23, %v887_v26 }
 0x157   :  { %v523_v19 = vmul.f32 0.5, %v522_v44 }
 0x158   :  { %581 = vst [vmem:[%s1042_s3 + $0x78] sm:$0xff] %v565_v20 }
 0x159   :  { %v524_v24 = vsub.f32 1.5, %v523_v19  ;;  %573 = vst [vmem:[%s1042_s3 + $0x38] sm:$0xff] %v557_v21 }
 0x15b   :  { %v525_v27 = vmul.f32 %v721_v10, %v524_v24 }
 0x15d   :  { %v529_v28 = vsel %vm528_vm15, %v721_v10, %v525_v27 }
 0x15e   :  { %v563_v25 = vmul.f32 %v529_v28, %v898_v32 }
 0x160   :  { %579 = vst [vmem:[%s1042_s3 + $0x68] sm:$0xff] %v563_v25 }

// kernel: lightgcn_forward.14
= control target key start
LH: loop header
LB: loop body
LE: loop exit
PB: predicated region body
PF: predicated region fallthrough
CT: control target
= control target key end

     0   :  { %s241_s0 = inlined_call_operand.vmem [shape: bf16[8,128], index: 0, kind: input, shape index: {}]   ;;  %s242_s1 = inlined_call_operand.vmem [shape: f32[8,1], index: 1, kind: input, shape index: {}]   ;;  %s243_s2 = inlined_call_operand.vmem [shape: bf16[128,128], index: 2, kind: input, shape index: {}]   ;;  %s244_s3 = inlined_call_operand.hbm [shape: f32[8,128], index: 3, kind: output, shape index: {}]  }
   0x1   :  { %v156_v0 = vld [vmem:[%s243_s2 + $0x38] sm:$0xff] }
   0x2   :  { %8 = vsyncpa [#allocation3], 0  ;;  %80 = vmatpush.bf16.xpose.msra.mxu0 %v156_v0  ;;  %v155_v1 = vld [vmem:[%s243_s2 + $0x30] sm:$0xff]  ;;  %v154_v2 = vld [vmem:[%s243_s2 + $0x28] sm:$0xff]  ;;  %v186_v6 = vmov 0   ;;  %s187_s4 = smov [#allocation2]  }
   0x3   :  { %v153_v3 = vld [vmem:[%s243_s2 + $0x20] sm:$0xff]  ;;  %v152_v4 = vld [vmem:[%s243_s2 + $0x18] sm:$0xff]  ;;  %159 = vset.pattern.permute.xlu0 %v186_v6  ;;  %v151_v7 = vld [vmem:[%s243_s2 + $0x10] sm:$0xff]  ;;  %s106_s5 = sshll.u32 %s187_s4, 4  ;;  %s108_s8 = sshll.u32 %s244_s3, 4  ;;  %s107_s5 = int_to_ptr.vmem [resolvable:$true] %s106_s5  ;;  %s109_s8 = int_to_ptr.hbm [resolvable:$true] %s108_s8 }
   0x4   :  { %v93_v5 = vld [vmem:[%s242_s1] sm:$0xff]  ;;  %v150_v8 = vld [vmem:[%s243_s2 + $0x8] sm:$0xff] }
   0x5   :  { %96 = vperm.xlu0 %159, %v93_v5   ;;  %v149_v9 = vld [vmem:[%s243_s2] sm:$0xff] }
   0x6   :  { %v15_v10 = vld [vmem:[%s241_s0] sm:$0xf] }
   0xa   :  { %81 = vmatpush.bf16.xpose.msra.mxu0 %v155_v1 }
  0x12   :  { %82 = vmatpush.bf16.xpose.msra.mxu0 %v154_v2 }
  0x1a   :  { %83 = vmatpush.bf16.xpose.msra.mxu0 %v153_v3 }
  0x22   :  { %84 = vmatpush.bf16.xpose.msra.mxu0 %v152_v4 }
  0x2a   :  { %85 = vmatpush.bf16.xpose.msra.mxu0 %v151_v7 }
  0x32   :  { %86 = vmatpush.bf16.xpose.msra.mxu0 %v150_v8 }
  0x3a   :  { %87 = vmatpush.bf16.xpose.msra.mxu0 %v149_v9 }
  0x41   :  { %88 = vmatmul.bf16.vlgmr.msra.gmra.mxu0 %v15_v10 }
  0x77   :  { %v97_v11 = vpop.permute.xlu0 %96 }
  0xbe   :  { %v89_v12 = vpop.f32.mrf.mxu0 }
  0xbf   :  { %v99_v13 = vsub.f32 %v89_v12, %v97_v11 }
  0xc1   :  { %100 = vst [vmem:[#allocation2] sm:$0xff] %v99_v13 }
  0xc2   :  { %111 = dma.vmem_to_hbm [thread:$0]  %s107_s5, 128, %s109_s8, [#allocation3]  }
  0xc6   :  { %v91_v14 = vpop.f32.mrf.mxu0 }
  0xc7   :  { %184 = dma.done.wait [#allocation3], 128  }
  0xc8   :  { %185 = vsyncadd [#allocation3], 4294967168 }
  0xc9   :  { %116 = vsyncpa [#allocation3], 1 }

</bundles_post_ra>
